<compile_context>
chip_gen: v5e
topology: v5e:2x2
jax: 0.10.0
libtpu: 0.0.40
codegen_flags: <defaults>
</compile_context>

<pallas_src>
import functools

import jax
import jax.numpy as jnp
from jax import lax
from jax.experimental import pallas as pl
from jax.experimental.pallas import tpu as pltpu

# ----------------------------- config (small BERT) ---------------------------
VOCAB = 100
HIDDEN = 32
NUM_HEADS = 2
HEAD_DIM = HIDDEN // NUM_HEADS
NUM_LAYERS = 2
FFN = 64
N_CLASS = 3
MAX_POS = 16
BATCH = 2
SEQ = 8
LN_EPS = 1e-12
ATTN_SCALE = 1.0 / float(HEAD_DIM) ** 0.5
NEG_INF = -1e9
LANES = 128          # slab lane width (vreg lane count)
SUBLANES = 8         # slab blocks start on 8-row (sublane) boundaries


# ------------------------------ shared math helpers ---------------------------
def _layernorm(x, gamma, beta, eps=LN_EPS):
    mean = jnp.mean(x, axis=-1, keepdims=True)
    var = jnp.mean(jnp.square(x - mean), axis=-1, keepdims=True)
    return (x - mean) * lax.rsqrt(var + eps) * gamma + beta


def _gelu(x):
    # exact (erf) GELU, matching HF BERT's "gelu"
    return 0.5 * x * (1.0 + lax.erf(x * (1.0 / 2.0 ** 0.5)))


# --------------------------- fused whole-model kernel --------------------------
def _bert_kernel(ids_ref, slab_ref, out_ref, *, offs, batch, seq):
    bs = batch * seq
    f32 = jnp.float32

    def blk(name):
        # static, sublane-aligned slice into the packed parameter slab
        r, h, w = offs[name]
        return slab_ref[r:r + h, :w]

    # ---- embeddings: token gather (one-hot matmul) + pos/type + LayerNorm ----
    # TODO(synk): for large VOCAB replace the one-hot matmul with a scalar-
    #             prefetched row gather (PrefetchScalarGridSpec + pl.Element).
    ids = ids_ref[...]                                              # (BS, 1) int32
    onehot = (ids == lax.broadcasted_iota(jnp.int32, (bs, VOCAB), 1)
              ).astype(f32)                                         # (BS, VOCAB)
    x = jnp.dot(onehot, blk("tok_emb"), preferred_element_type=f32)  # (BS, H)
    x = x + blk("pos_type")                                         # pre-tiled (BS, H)
    x = _layernorm(x, blk("emb_ln_g"), blk("emb_ln_b"))

    # block-diagonal additive bias: 0 within a batch element, -1e9 across them,
    # so attention runs on full (BS, BS) tiles with no per-batch slicing.
    attn_bias = blk("attn_bias")                                    # (BS, BS)

    # ---- transformer layers (statically unrolled, everything VMEM-resident) ----
    for l in range(NUM_LAYERS):
        attn = jnp.zeros((bs, HIDDEN), f32)
        for h in range(NUM_HEADS):
            q = jnp.dot(x, blk(f"wq_{l}_{h}"),
                        preferred_element_type=f32) + blk(f"bq_{l}_{h}")   # (BS, HD)
            k = jnp.dot(x, blk(f"wk_{l}_{h}"),
                        preferred_element_type=f32) + blk(f"bk_{l}_{h}")
            v = jnp.dot(x, blk(f"wv_{l}_{h}"),
                        preferred_element_type=f32) + blk(f"bv_{l}_{h}")
            # q @ k^T without an explicit transpose (MXU-native contraction)
            s = lax.dot_general(q, k, (((1,), (1,)), ((), ())),
                                preferred_element_type=f32) * ATTN_SCALE
            s = s + attn_bias                                               # (BS, BS)
            m = jnp.max(s, axis=-1, keepdims=True)
            p = jnp.exp(s - m)
            p = p * pl.reciprocal(jnp.sum(p, axis=-1, keepdims=True),
                                  approx=True)
            ctx = jnp.dot(p, v, preferred_element_type=f32)                 # (BS, HD)
            # merge heads by accumulating the per-head output projection
            attn = attn + jnp.dot(ctx, blk(f"wo_{l}_{h}"),
                                  preferred_element_type=f32)               # (BS, H)
        attn = attn + blk(f"bo_{l}")
        x = _layernorm(x + attn, blk(f"ln1_g_{l}"), blk(f"ln1_b_{l}"))

        # FFN (GELU) + residual + LayerNorm
        ff = _gelu(jnp.dot(x, blk(f"w1_{l}"),
                           preferred_element_type=f32) + blk(f"b1_{l}"))
        ff = jnp.dot(ff, blk(f"w2_{l}"),
                     preferred_element_type=f32) + blk(f"b2_{l}")
        x = _layernorm(x + ff, blk(f"ln2_g_{l}"), blk(f"ln2_b_{l}"))

    # ---- pooler on [CLS] token + classifier head (dropout = identity in eval) ----
    cls = jnp.dot(blk("cls_sel"), x, preferred_element_type=f32)     # (B, H), one-hot select
    pooled = jnp.tanh(jnp.dot(cls, blk("pool_w"),
                              preferred_element_type=f32) + blk("pool_b"))
    logits = jnp.dot(pooled, blk("cls_w"),
                     preferred_element_type=f32) + blk("cls_b")
    out_ref[...] = logits.astype(out_ref.dtype)


# --------------------------- parameter slab packing ----------------------------
def _pack_params(params, batch, seq):
    """Pack every parameter (plus batch-shape glue) into one (N, 128) f32 slab.

    Every logical block starts on an 8-row (sublane) boundary so all in-kernel
    slices are aligned loads.  Returns (slab, offsets{name: (row, h, w)}).
    """
    bs = batch * seq
    blocks = []

    def add(name, arr):
        blocks.append((name, jnp.asarray(arr, jnp.float32)))

    add("tok_emb", params["tok_emb"])                               # (VOCAB, H)
    pos_type = params["pos_emb"][:seq] + params["type_emb"][0][None, :]
    add("pos_type", jnp.tile(pos_type, (batch, 1)))                 # (BS, H)  (hoisted tiling)
    add("emb_ln_g", params["emb_ln_g"])
    add("emb_ln_b", params["emb_ln_b"])

    bi = jnp.arange(bs) // seq
    add("attn_bias", jnp.where(bi[:, None] == bi[None, :], 0.0, NEG_INF))   # (BS, BS)
    add("cls_sel", (jnp.arange(bs)[None, :] ==
                    (jnp.arange(batch) * seq)[:, None]).astype(jnp.float32))  # (B, BS)

    for l in range(NUM_LAYERS):
        for h in range(NUM_HEADS):
            c0, c1 = h * HEAD_DIM, (h + 1) * HEAD_DIM
            add(f"wq_{l}_{h}", params["wq"][l][:, c0:c1])           # (H, HD)
            add(f"wk_{l}_{h}", params["wk"][l][:, c0:c1])
            add(f"wv_{l}_{h}", params["wv"][l][:, c0:c1])
            add(f"bq_{l}_{h}", params["bq"][l][:, c0:c1])           # (1, HD)
            add(f"bk_{l}_{h}", params["bk"][l][:, c0:c1])
            add(f"bv_{l}_{h}", params["bv"][l][:, c0:c1])
            add(f"wo_{l}_{h}", params["wo"][l][c0:c1, :])           # (HD, H)
        add(f"bo_{l}", params["bo"][l])
        add(f"ln1_g_{l}", params["ln1_g"][l])
        add(f"ln1_b_{l}", params["ln1_b"][l])
        add(f"w1_{l}", params["w1"][l])
        add(f"b1_{l}", params["b1"][l])
        add(f"w2_{l}", params["w2"][l])
        add(f"b2_{l}", params["b2"][l])
        add(f"ln2_g_{l}", params["ln2_g"][l])
        add(f"ln2_b_{l}", params["ln2_b"][l])

    add("pool_w", params["pool_w"])
    add("pool_b", params["pool_b"])
    add("cls_w", params["cls_w"])
    add("cls_b", params["cls_b"])

    offs, rows, r = {}, [], 0
    for name, a in blocks:
        h, w = a.shape
        assert w <= LANES, name
        hp = -(-h // SUBLANES) * SUBLANES
        rows.append(jnp.pad(a, ((0, hp - h), (0, LANES - w))))
        offs[name] = (r, h, w)
        r += hp
    return jnp.concatenate(rows, axis=0), offs


def _full_spec(shape):
    nd = len(shape)
    return pl.BlockSpec(shape, lambda i, _nd=nd: (0,) * _nd)


def bert_forward(params, token_ids):
    """token_ids: (B, S) int32 -> logits (B, N_CLASS) float32."""
    B, S = token_ids.shape
    ids = token_ids.reshape(B * S, 1).astype(jnp.int32)
    slab, offs = _pack_params(params, B, S)   # one contiguous lane-dense slab -> one DMA

    cost = pl.CostEstimate(
        flops=700_000,
        transcendentals=4_096,
        bytes_accessed=int(slab.size * 4 + ids.size * 4 + B * N_CLASS * 4),
    )

    return pl.pallas_call(
        functools.partial(_bert_kernel, offs=offs, batch=B, seq=S),
        out_shape=jax.ShapeDtypeStruct((B, N_CLASS), jnp.float32),
        grid=(1,),
        in_specs=[_full_spec(ids.shape), _full_spec(slab.shape)],
        out_specs=_full_spec((B, N_CLASS)),
        compiler_params=pltpu.CompilerParams(
            dimension_semantics=("arbitrary",)),
        cost_estimate=cost,
    )(ids, slab)


# ------------------------------ parameter init --------------------------------
def init_params(key):
    def nrm(k, shape, scale=0.02):
        return jax.random.normal(k, shape, dtype=jnp.float32) * scale

    keys = iter(jax.random.split(key, 8 + NUM_LAYERS * 8))
    params = {
        "tok_emb": nrm(next(keys), (VOCAB, HIDDEN)),
        "pos_emb": nrm(next(keys), (MAX_POS, HIDDEN)),
        "type_emb": nrm(next(keys), (2, HIDDEN)),
        "emb_ln_g": jnp.ones((1, HIDDEN), jnp.float32),
        "emb_ln_b": jnp.zeros((1, HIDDEN), jnp.float32),
        "pool_w": nrm(next(keys), (HIDDEN, HIDDEN)),
        "pool_b": jnp.zeros((1, HIDDEN), jnp.float32),
        "cls_w": nrm(next(keys), (HIDDEN, N_CLASS)),
        "cls_b": jnp.zeros((1, N_CLASS), jnp.float32),
    }
    wq, wk, wv, wo, w1, w2 = [], [], [], [], [], []
    for _ in range(NUM_LAYERS):
        wq.append(nrm(next(keys), (HIDDEN, HIDDEN)))
        wk.append(nrm(next(keys), (HIDDEN, HIDDEN)))
        wv.append(nrm(next(keys), (HIDDEN, HIDDEN)))
        wo.append(nrm(next(keys), (HIDDEN, HIDDEN)))
        w1.append(nrm(next(keys), (HIDDEN, FFN)))
        w2.append(nrm(next(keys), (FFN, HIDDEN)))
    L = NUM_LAYERS
    params.update({
        "wq": jnp.stack(wq), "wk": jnp.stack(wk), "wv": jnp.stack(wv),
        "bq": jnp.zeros((L, 1, HIDDEN), jnp.float32),
        "bk": jnp.zeros((L, 1, HIDDEN), jnp.float32),
        "bv": jnp.zeros((L, 1, HIDDEN), jnp.float32),
        "wo": jnp.stack(wo), "bo": jnp.zeros((L, 1, HIDDEN), jnp.float32),
        "ln1_g": jnp.ones((L, 1, HIDDEN), jnp.float32),
        "ln1_b": jnp.zeros((L, 1, HIDDEN), jnp.float32),
        "w1": jnp.stack(w1), "b1": jnp.zeros((L, 1, FFN), jnp.float32),
        "w2": jnp.stack(w2), "b2": jnp.zeros((L, 1, HIDDEN), jnp.float32),
        "ln2_g": jnp.ones((L, 1, HIDDEN), jnp.float32),
        "ln2_b": jnp.zeros((L, 1, HIDDEN), jnp.float32),
    })
    return params


# --------------------------- pure-JAX reference (check) ------------------------
def bert_reference(params, token_ids):
    B, S = token_ids.shape
    hi = lax.Precision.HIGHEST
    x = (jnp.take(params["tok_emb"], token_ids.reshape(-1), axis=0)
         + jnp.tile(params["pos_emb"][:S] + params["type_emb"][0][None, :], (B, 1)))
    x = _layernorm(x, params["emb_ln_g"], params["emb_ln_b"])
    for l in range(NUM_LAYERS):
        q = jnp.dot(x, params["wq"][l], precision=hi) + params["bq"][l]
        k = jnp.dot(x, params["wk"][l], precision=hi) + params["bk"][l]
        v = jnp.dot(x, params["wv"][l], precision=hi) + params["bv"][l]

        def heads(t):
            return t.reshape(B, S, NUM_HEADS, HEAD_DIM).transpose(0, 2, 1, 3)
        qh, kh, vh = heads(q), heads(k), heads(v)
        s = jnp.einsum("bhqd,bhkd->bhqk", qh, kh, precision=hi) * ATTN_SCALE
        p = jax.nn.softmax(s, axis=-1)
        ctx = jnp.einsum("bhqk,bhkd->bhqd", p, vh, precision=hi)
        ctx = ctx.transpose(0, 2, 1, 3).reshape(B * S, HIDDEN)
        attn_out = jnp.dot(ctx, params["wo"][l], precision=hi) + params["bo"][l]
        x = _layernorm(x + attn_out, params["ln1_g"][l], params["ln1_b"][l])
        ff = _gelu(jnp.dot(x, params["w1"][l], precision=hi) + params["b1"][l])
        ff = jnp.dot(ff, params["w2"][l], precision=hi) + params["b2"][l]
        x = _layernorm(x + ff, params["ln2_g"][l], params["ln2_b"][l])
    cls = x.reshape(B, S, HIDDEN)[:, 0, :]
    pooled = jnp.tanh(jnp.dot(cls, params["pool_w"], precision=hi) + params["pool_b"])
    return jnp.dot(pooled, params["cls_w"], precision=hi) + params["cls_b"]


# ----------------------------------- main --------------------------------------
if __name__ == "__main__":
    key = jax.random.PRNGKey(0)
    pkey, dkey = jax.random.split(key)
    params = init_params(pkey)

    token_ids = jax.random.randint(dkey, (BATCH, SEQ), 0, VOCAB, dtype=jnp.int32)

    logits = jax.jit(bert_forward)(params, token_ids)
    logits = jax.block_until_ready(logits)

    assert logits.shape == (BATCH, N_CLASS)
    assert logits.dtype == jnp.float32
    assert bool(jnp.all(jnp.isfinite(logits)))

    ref = jax.block_until_ready(jax.jit(bert_reference)(params, token_ids))
    assert bool(jnp.allclose(logits, ref, atol=5e-3, rtol=5e-2)), (logits, ref)

    print("KERNEL_OK")
</pallas_src>

<mosaic_0001>
module attributes {stable_mosaic.version = 11 : i64} {
  func.func @_bert_kernel(%arg0: i32, %arg1: memref<16x1xi32, #tpu.memory_space<vmem>>, %arg2: memref<1088x128xf32, #tpu.memory_space<vmem>>, %arg3: memref<2x3xf32, #tpu.memory_space<vmem>>) attributes {dimension_semantics = [#tpu.dimension_semantics<arbitrary>], iteration_bounds = array<i64: 1>, scalar_prefetch = 0 : i64, scratch_operands = 0 : i64, tpu.core_type = #tpu.core_type<tc>, window_params = [{pipeline_mode = #tpu.pipeline_mode<synchronous>, transform_indices = @transform_0, window_bounds = array<i64: 16, 1>}, {pipeline_mode = #tpu.pipeline_mode<synchronous>, transform_indices = @transform_1, window_bounds = array<i64: 1088, 128>}, {pipeline_mode = #tpu.pipeline_mode<synchronous>, transform_indices = @transform_2, window_bounds = array<i64: 2, 3>}]} {
    %c0 = arith.constant 0 : index
    %c0_0 = arith.constant 0 : index
    %0 = vector.load %arg1[%c0, %c0_0] : memref<16x1xi32, #tpu.memory_space<vmem>>, vector<16x1xi32>
    %1 = tpu.iota {dimensions = array<i32: 1>} : vector<16x100xi32>
    %2 = vector.broadcast %0 : vector<16x1xi32> to vector<16x100xi32>
    %3 = arith.cmpi eq, %2, %1 : vector<16x100xi32>
    %4 = arith.extui %3 : vector<16x100xi1> to vector<16x100xi32>
    %5 = arith.sitofp %4 : vector<16x100xi32> to vector<16x100xf32>
    %c0_1 = arith.constant 0 : index
    %c0_2 = arith.constant 0 : index
    %6 = vector.load %arg2[%c0_1, %c0_2] : memref<1088x128xf32, #tpu.memory_space<vmem>>, vector<100x32xf32>
    %cst = arith.constant dense<0.000000e+00> : vector<16x32xf32>
    %7 = tpu.matmul %5, %6, %cst {dimension_numbers = #tpu.dot_dimension_numbers<[1], [0], [0], [1], [0, 0, 1, 1], [], []>} : vector<16x100xf32>, vector<100x32xf32>, vector<16x32xf32> -> vector<16x32xf32>
    %c104 = arith.constant 104 : index
    %c0_3 = arith.constant 0 : index
    %8 = vector.load %arg2[%c104, %c0_3] : memref<1088x128xf32, #tpu.memory_space<vmem>>, vector<16x32xf32>
    %9 = arith.addf %7, %8 : vector<16x32xf32>
    %c120 = arith.constant 120 : index
    %c0_4 = arith.constant 0 : index
    %10 = vector.load %arg2[%c120, %c0_4] : memref<1088x128xf32, #tpu.memory_space<vmem>>, vector<1x32xf32>
    %c128 = arith.constant 128 : index
    %c0_5 = arith.constant 0 : index
    %11 = vector.load %arg2[%c128, %c0_5] : memref<1088x128xf32, #tpu.memory_space<vmem>>, vector<1x32xf32>
    %cst_6 = arith.constant dense<0.000000e+00> : vector<16xf32>
    %12 = vector.multi_reduction <add>, %9, %cst_6 [1] : vector<16x32xf32> to vector<16xf32>
    %13 = vector.shape_cast %12 : vector<16xf32> to vector<16x1xf32>
    %cst_7 = arith.constant 3.200000e+01 : f32
    %14 = vector.broadcast %cst_7 : f32 to vector<16x1xf32>
    %15 = arith.divf %13, %14 : vector<16x1xf32>
    %16 = vector.broadcast %15 : vector<16x1xf32> to vector<16x32xf32>
    %17 = arith.subf %9, %16 : vector<16x32xf32>
    %18 = arith.mulf %17, %17 : vector<16x32xf32>
    %cst_8 = arith.constant dense<0.000000e+00> : vector<16xf32>
    %19 = vector.multi_reduction <add>, %18, %cst_8 [1] : vector<16x32xf32> to vector<16xf32>
    %20 = vector.shape_cast %19 : vector<16xf32> to vector<16x1xf32>
    %cst_9 = arith.constant 3.200000e+01 : f32
    %21 = vector.broadcast %cst_9 : f32 to vector<16x1xf32>
    %22 = arith.divf %20, %21 : vector<16x1xf32>
    %23 = vector.broadcast %15 : vector<16x1xf32> to vector<16x32xf32>
    %24 = arith.subf %9, %23 : vector<16x32xf32>
    %cst_10 = arith.constant 9.99999996E-13 : f32
    %25 = vector.broadcast %cst_10 : f32 to vector<16x1xf32>
    %26 = arith.addf %22, %25 : vector<16x1xf32>
    %27 = math.rsqrt %26 : vector<16x1xf32>
    %28 = vector.broadcast %27 : vector<16x1xf32> to vector<16x32xf32>
    %29 = arith.mulf %24, %28 : vector<16x32xf32>
    %30 = vector.broadcast %10 : vector<1x32xf32> to vector<16x32xf32>
    %31 = arith.mulf %29, %30 : vector<16x32xf32>
    %32 = vector.broadcast %11 : vector<1x32xf32> to vector<16x32xf32>
    %33 = arith.addf %31, %32 : vector<16x32xf32>
    %c136 = arith.constant 136 : index
    %c0_11 = arith.constant 0 : index
    %34 = vector.load %arg2[%c136, %c0_11] : memref<1088x128xf32, #tpu.memory_space<vmem>>, vector<16x16xf32>
    %cst_12 = arith.constant 0.000000e+00 : f32
    %35 = vector.broadcast %cst_12 : f32 to vector<16x32xf32>
    %c160 = arith.constant 160 : index
    %c0_13 = arith.constant 0 : index
    %36 = vector.load %arg2[%c160, %c0_13] : memref<1088x128xf32, #tpu.memory_space<vmem>>, vector<32x16xf32>
    %cst_14 = arith.constant dense<0.000000e+00> : vector<16x16xf32>
    %37 = tpu.matmul %33, %36, %cst_14 {dimension_numbers = #tpu.dot_dimension_numbers<[1], [0], [0], [1], [0, 0, 1, 1], [], []>} : vector<16x32xf32>, vector<32x16xf32>, vector<16x16xf32> -> vector<16x16xf32>
    %c256 = arith.constant 256 : index
    %c0_15 = arith.constant 0 : index
    %38 = vector.load %arg2[%c256, %c0_15] : memref<1088x128xf32, #tpu.memory_space<vmem>>, vector<1x16xf32>
    %39 = vector.broadcast %38 : vector<1x16xf32> to vector<16x16xf32>
    %40 = arith.addf %37, %39 : vector<16x16xf32>
    %c192 = arith.constant 192 : index
    %c0_16 = arith.constant 0 : index
    %41 = vector.load %arg2[%c192, %c0_16] : memref<1088x128xf32, #tpu.memory_space<vmem>>, vector<32x16xf32>
    %cst_17 = arith.constant dense<0.000000e+00> : vector<16x16xf32>
    %42 = tpu.matmul %33, %41, %cst_17 {dimension_numbers = #tpu.dot_dimension_numbers<[1], [0], [0], [1], [0, 0, 1, 1], [], []>} : vector<16x32xf32>, vector<32x16xf32>, vector<16x16xf32> -> vector<16x16xf32>
    %c264 = arith.constant 264 : index
    %c0_18 = arith.constant 0 : index
    %43 = vector.load %arg2[%c264, %c0_18] : memref<1088x128xf32, #tpu.memory_space<vmem>>, vector<1x16xf32>
    %44 = vector.broadcast %43 : vector<1x16xf32> to vector<16x16xf32>
    %45 = arith.addf %42, %44 : vector<16x16xf32>
    %c224 = arith.constant 224 : index
    %c0_19 = arith.constant 0 : index
    %46 = vector.load %arg2[%c224, %c0_19] : memref<1088x128xf32, #tpu.memory_space<vmem>>, vector<32x16xf32>
    %cst_20 = arith.constant dense<0.000000e+00> : vector<16x16xf32>
    %47 = tpu.matmul %33, %46, %cst_20 {dimension_numbers = #tpu.dot_dimension_numbers<[1], [0], [0], [1], [0, 0, 1, 1], [], []>} : vector<16x32xf32>, vector<32x16xf32>, vector<16x16xf32> -> vector<16x16xf32>
    %c272 = arith.constant 272 : index
    %c0_21 = arith.constant 0 : index
    %48 = vector.load %arg2[%c272, %c0_21] : memref<1088x128xf32, #tpu.memory_space<vmem>>, vector<1x16xf32>
    %49 = vector.broadcast %48 : vector<1x16xf32> to vector<16x16xf32>
    %50 = arith.addf %47, %49 : vector<16x16xf32>
    %cst_22 = arith.constant dense<0.000000e+00> : vector<16x16xf32>
    %51 = tpu.matmul %40, %45, %cst_22 {dimension_numbers = #tpu.dot_dimension_numbers<[1], [1], [0], [0], [0, 0, 1, 0], [], []>} : vector<16x16xf32>, vector<16x16xf32>, vector<16x16xf32> -> vector<16x16xf32>
    %cst_23 = arith.constant 2.500000e-01 : f32
    %52 = vector.broadcast %cst_23 : f32 to vector<16x16xf32>
    %53 = arith.mulf %51, %52 : vector<16x16xf32>
    %54 = arith.addf %53, %34 : vector<16x16xf32>
    %cst_24 = arith.constant dense<0xFF800000> : vector<16xf32>
    %55 = vector.multi_reduction <maximumf>, %54, %cst_24 [1] : vector<16x16xf32> to vector<16xf32>
    %56 = vector.shape_cast %55 : vector<16xf32> to vector<16x1xf32>
    %57 = vector.broadcast %56 : vector<16x1xf32> to vector<16x16xf32>
    %58 = arith.subf %54, %57 : vector<16x16xf32>
    %59 = math.exp %58 : vector<16x16xf32>
    %cst_25 = arith.constant dense<0.000000e+00> : vector<16xf32>
    %60 = vector.multi_reduction <add>, %59, %cst_25 [1] : vector<16x16xf32> to vector<16xf32>
    %61 = vector.shape_cast %60 : vector<16xf32> to vector<16x1xf32>
    %62 = tpu.reciprocal %61 {approx = true} : vector<16x1xf32> -> vector<16x1xf32>
    %63 = vector.broadcast %62 : vector<16x1xf32> to vector<16x16xf32>
    %64 = arith.mulf %59, %63 : vector<16x16xf32>
    %cst_26 = arith.constant dense<0.000000e+00> : vector<16x16xf32>
    %65 = tpu.matmul %64, %50, %cst_26 {dimension_numbers = #tpu.dot_dimension_numbers<[1], [0], [0], [1], [0, 0, 1, 1], [], []>} : vector<16x16xf32>, vector<16x16xf32>, vector<16x16xf32> -> vector<16x16xf32>
    %c280 = arith.constant 280 : index
    %c0_27 = arith.constant 0 : index
    %66 = vector.load %arg2[%c280, %c0_27] : memref<1088x128xf32, #tpu.memory_space<vmem>>, vector<16x32xf32>
    %cst_28 = arith.constant dense<0.000000e+00> : vector<16x32xf32>
    %67 = tpu.matmul %65, %66, %cst_28 {dimension_numbers = #tpu.dot_dimension_numbers<[1], [0], [0], [1], [0, 0, 1, 1], [], []>} : vector<16x16xf32>, vector<16x32xf32>, vector<16x32xf32> -> vector<16x32xf32>
    %68 = arith.addf %35, %67 : vector<16x32xf32>
    %c296 = arith.constant 296 : index
    %c0_29 = arith.constant 0 : index
    %69 = vector.load %arg2[%c296, %c0_29] : memref<1088x128xf32, #tpu.memory_space<vmem>>, vector<32x16xf32>
    %cst_30 = arith.constant dense<0.000000e+00> : vector<16x16xf32>
    %70 = tpu.matmul %33, %69, %cst_30 {dimension_numbers = #tpu.dot_dimension_numbers<[1], [0], [0], [1], [0, 0, 1, 1], [], []>} : vector<16x32xf32>, vector<32x16xf32>, vector<16x16xf32> -> vector<16x16xf32>
    %c392 = arith.constant 392 : index
    %c0_31 = arith.constant 0 : index
    %71 = vector.load %arg2[%c392, %c0_31] : memref<1088x128xf32, #tpu.memory_space<vmem>>, vector<1x16xf32>
    %72 = vector.broadcast %71 : vector<1x16xf32> to vector<16x16xf32>
    %73 = arith.addf %70, %72 : vector<16x16xf32>
    %c328 = arith.constant 328 : index
    %c0_32 = arith.constant 0 : index
    %74 = vector.load %arg2[%c328, %c0_32] : memref<1088x128xf32, #tpu.memory_space<vmem>>, vector<32x16xf32>
    %cst_33 = arith.constant dense<0.000000e+00> : vector<16x16xf32>
    %75 = tpu.matmul %33, %74, %cst_33 {dimension_numbers = #tpu.dot_dimension_numbers<[1], [0], [0], [1], [0, 0, 1, 1], [], []>} : vector<16x32xf32>, vector<32x16xf32>, vector<16x16xf32> -> vector<16x16xf32>
    %c400 = arith.constant 400 : index
    %c0_34 = arith.constant 0 : index
    %76 = vector.load %arg2[%c400, %c0_34] : memref<1088x128xf32, #tpu.memory_space<vmem>>, vector<1x16xf32>
    %77 = vector.broadcast %76 : vector<1x16xf32> to vector<16x16xf32>
    %78 = arith.addf %75, %77 : vector<16x16xf32>
    %c360 = arith.constant 360 : index
    %c0_35 = arith.constant 0 : index
    %79 = vector.load %arg2[%c360, %c0_35] : memref<1088x128xf32, #tpu.memory_space<vmem>>, vector<32x16xf32>
    %cst_36 = arith.constant dense<0.000000e+00> : vector<16x16xf32>
    %80 = tpu.matmul %33, %79, %cst_36 {dimension_numbers = #tpu.dot_dimension_numbers<[1], [0], [0], [1], [0, 0, 1, 1], [], []>} : vector<16x32xf32>, vector<32x16xf32>, vector<16x16xf32> -> vector<16x16xf32>
    %c408 = arith.constant 408 : index
    %c0_37 = arith.constant 0 : index
    %81 = vector.load %arg2[%c408, %c0_37] : memref<1088x128xf32, #tpu.memory_space<vmem>>, vector<1x16xf32>
    %82 = vector.broadcast %81 : vector<1x16xf32> to vector<16x16xf32>
    %83 = arith.addf %80, %82 : vector<16x16xf32>
    %cst_38 = arith.constant dense<0.000000e+00> : vector<16x16xf32>
    %84 = tpu.matmul %73, %78, %cst_38 {dimension_numbers = #tpu.dot_dimension_numbers<[1], [1], [0], [0], [0, 0, 1, 0], [], []>} : vector<16x16xf32>, vector<16x16xf32>, vector<16x16xf32> -> vector<16x16xf32>
    %cst_39 = arith.constant 2.500000e-01 : f32
    %85 = vector.broadcast %cst_39 : f32 to vector<16x16xf32>
    %86 = arith.mulf %84, %85 : vector<16x16xf32>
    %87 = arith.addf %86, %34 : vector<16x16xf32>
    %cst_40 = arith.constant dense<0xFF800000> : vector<16xf32>
    %88 = vector.multi_reduction <maximumf>, %87, %cst_40 [1] : vector<16x16xf32> to vector<16xf32>
    %89 = vector.shape_cast %88 : vector<16xf32> to vector<16x1xf32>
    %90 = vector.broadcast %89 : vector<16x1xf32> to vector<16x16xf32>
    %91 = arith.subf %87, %90 : vector<16x16xf32>
    %92 = math.exp %91 : vector<16x16xf32>
    %cst_41 = arith.constant dense<0.000000e+00> : vector<16xf32>
    %93 = vector.multi_reduction <add>, %92, %cst_41 [1] : vector<16x16xf32> to vector<16xf32>
    %94 = vector.shape_cast %93 : vector<16xf32> to vector<16x1xf32>
    %95 = tpu.reciprocal %94 {approx = true} : vector<16x1xf32> -> vector<16x1xf32>
    %96 = vector.broadcast %95 : vector<16x1xf32> to vector<16x16xf32>
    %97 = arith.mulf %92, %96 : vector<16x16xf32>
    %cst_42 = arith.constant dense<0.000000e+00> : vector<16x16xf32>
    %98 = tpu.matmul %97, %83, %cst_42 {dimension_numbers = #tpu.dot_dimension_numbers<[1], [0], [0], [1], [0, 0, 1, 1], [], []>} : vector<16x16xf32>, vector<16x16xf32>, vector<16x16xf32> -> vector<16x16xf32>
    %c416 = arith.constant 416 : index
    %c0_43 = arith.constant 0 : index
    %99 = vector.load %arg2[%c416, %c0_43] : memref<1088x128xf32, #tpu.memory_space<vmem>>, vector<16x32xf32>
    %cst_44 = arith.constant dense<0.000000e+00> : vector<16x32xf32>
    %100 = tpu.matmul %98, %99, %cst_44 {dimension_numbers = #tpu.dot_dimension_numbers<[1], [0], [0], [1], [0, 0, 1, 1], [], []>} : vector<16x16xf32>, vector<16x32xf32>, vector<16x32xf32> -> vector<16x32xf32>
    %101 = arith.addf %68, %100 : vector<16x32xf32>
    %c432 = arith.constant 432 : index
    %c0_45 = arith.constant 0 : index
    %102 = vector.load %arg2[%c432, %c0_45] : memref<1088x128xf32, #tpu.memory_space<vmem>>, vector<1x32xf32>
    %103 = vector.broadcast %102 : vector<1x32xf32> to vector<16x32xf32>
    %104 = arith.addf %101, %103 : vector<16x32xf32>
    %105 = arith.addf %33, %104 : vector<16x32xf32>
    %c440 = arith.constant 440 : index
    %c0_46 = arith.constant 0 : index
    %106 = vector.load %arg2[%c440, %c0_46] : memref<1088x128xf32, #tpu.memory_space<vmem>>, vector<1x32xf32>
    %c448 = arith.constant 448 : index
    %c0_47 = arith.constant 0 : index
    %107 = vector.load %arg2[%c448, %c0_47] : memref<1088x128xf32, #tpu.memory_space<vmem>>, vector<1x32xf32>
    %cst_48 = arith.constant dense<0.000000e+00> : vector<16xf32>
    %108 = vector.multi_reduction <add>, %105, %cst_48 [1] : vector<16x32xf32> to vector<16xf32>
    %109 = vector.shape_cast %108 : vector<16xf32> to vector<16x1xf32>
    %cst_49 = arith.constant 3.200000e+01 : f32
    %110 = vector.broadcast %cst_49 : f32 to vector<16x1xf32>
    %111 = arith.divf %109, %110 : vector<16x1xf32>
    %112 = vector.broadcast %111 : vector<16x1xf32> to vector<16x32xf32>
    %113 = arith.subf %105, %112 : vector<16x32xf32>
    %114 = arith.mulf %113, %113 : vector<16x32xf32>
    %cst_50 = arith.constant dense<0.000000e+00> : vector<16xf32>
    %115 = vector.multi_reduction <add>, %114, %cst_50 [1] : vector<16x32xf32> to vector<16xf32>
    %116 = vector.shape_cast %115 : vector<16xf32> to vector<16x1xf32>
    %cst_51 = arith.constant 3.200000e+01 : f32
    %117 = vector.broadcast %cst_51 : f32 to vector<16x1xf32>
    %118 = arith.divf %116, %117 : vector<16x1xf32>
    %119 = vector.broadcast %111 : vector<16x1xf32> to vector<16x32xf32>
    %120 = arith.subf %105, %119 : vector<16x32xf32>
    %cst_52 = arith.constant 9.99999996E-13 : f32
    %121 = vector.broadcast %cst_52 : f32 to vector<16x1xf32>
    %122 = arith.addf %118, %121 : vector<16x1xf32>
    %123 = math.rsqrt %122 : vector<16x1xf32>
    %124 = vector.broadcast %123 : vector<16x1xf32> to vector<16x32xf32>
    %125 = arith.mulf %120, %124 : vector<16x32xf32>
    %126 = vector.broadcast %106 : vector<1x32xf32> to vector<16x32xf32>
    %127 = arith.mulf %125, %126 : vector<16x32xf32>
    %128 = vector.broadcast %107 : vector<1x32xf32> to vector<16x32xf32>
    %129 = arith.addf %127, %128 : vector<16x32xf32>
    %c456 = arith.constant 456 : index
    %c0_53 = arith.constant 0 : index
    %130 = vector.load %arg2[%c456, %c0_53] : memref<1088x128xf32, #tpu.memory_space<vmem>>, vector<32x64xf32>
    %cst_54 = arith.constant dense<0.000000e+00> : vector<16x64xf32>
    %131 = tpu.matmul %129, %130, %cst_54 {dimension_numbers = #tpu.dot_dimension_numbers<[1], [0], [0], [1], [0, 0, 1, 1], [], []>} : vector<16x32xf32>, vector<32x64xf32>, vector<16x64xf32> -> vector<16x64xf32>
    %c488 = arith.constant 488 : index
    %c0_55 = arith.constant 0 : index
    %132 = vector.load %arg2[%c488, %c0_55] : memref<1088x128xf32, #tpu.memory_space<vmem>>, vector<1x64xf32>
    %133 = vector.broadcast %132 : vector<1x64xf32> to vector<16x64xf32>
    %134 = arith.addf %131, %133 : vector<16x64xf32>
    %cst_56 = arith.constant 5.000000e-01 : f32
    %135 = vector.broadcast %cst_56 : f32 to vector<16x64xf32>
    %136 = arith.mulf %135, %134 : vector<16x64xf32>
    %cst_57 = arith.constant 0.707106769 : f32
    %137 = vector.broadcast %cst_57 : f32 to vector<16x64xf32>
    %138 = arith.mulf %134, %137 : vector<16x64xf32>
    %139 = math.erf %138 : vector<16x64xf32>
    %cst_58 = arith.constant 1.000000e+00 : f32
    %140 = vector.broadcast %cst_58 : f32 to vector<16x64xf32>
    %141 = arith.addf %140, %139 : vector<16x64xf32>
    %142 = arith.mulf %136, %141 : vector<16x64xf32>
    %c496 = arith.constant 496 : index
    %c0_59 = arith.constant 0 : index
    %143 = vector.load %arg2[%c496, %c0_59] : memref<1088x128xf32, #tpu.memory_space<vmem>>, vector<64x32xf32>
    %cst_60 = arith.constant dense<0.000000e+00> : vector<16x32xf32>
    %144 = tpu.matmul %142, %143, %cst_60 {dimension_numbers = #tpu.dot_dimension_numbers<[1], [0], [0], [1], [0, 0, 1, 1], [], []>} : vector<16x64xf32>, vector<64x32xf32>, vector<16x32xf32> -> vector<16x32xf32>
    %c560 = arith.constant 560 : index
    %c0_61 = arith.constant 0 : index
    %145 = vector.load %arg2[%c560, %c0_61] : memref<1088x128xf32, #tpu.memory_space<vmem>>, vector<1x32xf32>
    %146 = vector.broadcast %145 : vector<1x32xf32> to vector<16x32xf32>
    %147 = arith.addf %144, %146 : vector<16x32xf32>
    %148 = arith.addf %129, %147 : vector<16x32xf32>
    %c568 = arith.constant 568 : index
    %c0_62 = arith.constant 0 : index
    %149 = vector.load %arg2[%c568, %c0_62] : memref<1088x128xf32, #tpu.memory_space<vmem>>, vector<1x32xf32>
    %c576 = arith.constant 576 : index
    %c0_63 = arith.constant 0 : index
    %150 = vector.load %arg2[%c576, %c0_63] : memref<1088x128xf32, #tpu.memory_space<vmem>>, vector<1x32xf32>
    %cst_64 = arith.constant dense<0.000000e+00> : vector<16xf32>
    %151 = vector.multi_reduction <add>, %148, %cst_64 [1] : vector<16x32xf32> to vector<16xf32>
    %152 = vector.shape_cast %151 : vector<16xf32> to vector<16x1xf32>
    %cst_65 = arith.constant 3.200000e+01 : f32
    %153 = vector.broadcast %cst_65 : f32 to vector<16x1xf32>
    %154 = arith.divf %152, %153 : vector<16x1xf32>
    %155 = vector.broadcast %154 : vector<16x1xf32> to vector<16x32xf32>
    %156 = arith.subf %148, %155 : vector<16x32xf32>
    %157 = arith.mulf %156, %156 : vector<16x32xf32>
    %cst_66 = arith.constant dense<0.000000e+00> : vector<16xf32>
    %158 = vector.multi_reduction <add>, %157, %cst_66 [1] : vector<16x32xf32> to vector<16xf32>
    %159 = vector.shape_cast %158 : vector<16xf32> to vector<16x1xf32>
    %cst_67 = arith.constant 3.200000e+01 : f32
    %160 = vector.broadcast %cst_67 : f32 to vector<16x1xf32>
    %161 = arith.divf %159, %160 : vector<16x1xf32>
    %162 = vector.broadcast %154 : vector<16x1xf32> to vector<16x32xf32>
    %163 = arith.subf %148, %162 : vector<16x32xf32>
    %cst_68 = arith.constant 9.99999996E-13 : f32
    %164 = vector.broadcast %cst_68 : f32 to vector<16x1xf32>
    %165 = arith.addf %161, %164 : vector<16x1xf32>
    %166 = math.rsqrt %165 : vector<16x1xf32>
    %167 = vector.broadcast %166 : vector<16x1xf32> to vector<16x32xf32>
    %168 = arith.mulf %163, %167 : vector<16x32xf32>
    %169 = vector.broadcast %149 : vector<1x32xf32> to vector<16x32xf32>
    %170 = arith.mulf %168, %169 : vector<16x32xf32>
    %171 = vector.broadcast %150 : vector<1x32xf32> to vector<16x32xf32>
    %172 = arith.addf %170, %171 : vector<16x32xf32>
    %cst_69 = arith.constant 0.000000e+00 : f32
    %173 = vector.broadcast %cst_69 : f32 to vector<16x32xf32>
    %c584 = arith.constant 584 : index
    %c0_70 = arith.constant 0 : index
    %174 = vector.load %arg2[%c584, %c0_70] : memref<1088x128xf32, #tpu.memory_space<vmem>>, vector<32x16xf32>
    %cst_71 = arith.constant dense<0.000000e+00> : vector<16x16xf32>
    %175 = tpu.matmul %172, %174, %cst_71 {dimension_numbers = #tpu.dot_dimension_numbers<[1], [0], [0], [1], [0, 0, 1, 1], [], []>} : vector<16x32xf32>, vector<32x16xf32>, vector<16x16xf32> -> vector<16x16xf32>
    %c680 = arith.constant 680 : index
    %c0_72 = arith.constant 0 : index
    %176 = vector.load %arg2[%c680, %c0_72] : memref<1088x128xf32, #tpu.memory_space<vmem>>, vector<1x16xf32>
    %177 = vector.broadcast %176 : vector<1x16xf32> to vector<16x16xf32>
    %178 = arith.addf %175, %177 : vector<16x16xf32>
    %c616 = arith.constant 616 : index
    %c0_73 = arith.constant 0 : index
    %179 = vector.load %arg2[%c616, %c0_73] : memref<1088x128xf32, #tpu.memory_space<vmem>>, vector<32x16xf32>
    %cst_74 = arith.constant dense<0.000000e+00> : vector<16x16xf32>
    %180 = tpu.matmul %172, %179, %cst_74 {dimension_numbers = #tpu.dot_dimension_numbers<[1], [0], [0], [1], [0, 0, 1, 1], [], []>} : vector<16x32xf32>, vector<32x16xf32>, vector<16x16xf32> -> vector<16x16xf32>
    %c688 = arith.constant 688 : index
    %c0_75 = arith.constant 0 : index
    %181 = vector.load %arg2[%c688, %c0_75] : memref<1088x128xf32, #tpu.memory_space<vmem>>, vector<1x16xf32>
    %182 = vector.broadcast %181 : vector<1x16xf32> to vector<16x16xf32>
    %183 = arith.addf %180, %182 : vector<16x16xf32>
    %c648 = arith.constant 648 : index
    %c0_76 = arith.constant 0 : index
    %184 = vector.load %arg2[%c648, %c0_76] : memref<1088x128xf32, #tpu.memory_space<vmem>>, vector<32x16xf32>
    %cst_77 = arith.constant dense<0.000000e+00> : vector<16x16xf32>
    %185 = tpu.matmul %172, %184, %cst_77 {dimension_numbers = #tpu.dot_dimension_numbers<[1], [0], [0], [1], [0, 0, 1, 1], [], []>} : vector<16x32xf32>, vector<32x16xf32>, vector<16x16xf32> -> vector<16x16xf32>
    %c696 = arith.constant 696 : index
    %c0_78 = arith.constant 0 : index
    %186 = vector.load %arg2[%c696, %c0_78] : memref<1088x128xf32, #tpu.memory_space<vmem>>, vector<1x16xf32>
    %187 = vector.broadcast %186 : vector<1x16xf32> to vector<16x16xf32>
    %188 = arith.addf %185, %187 : vector<16x16xf32>
    %cst_79 = arith.constant dense<0.000000e+00> : vector<16x16xf32>
    %189 = tpu.matmul %178, %183, %cst_79 {dimension_numbers = #tpu.dot_dimension_numbers<[1], [1], [0], [0], [0, 0, 1, 0], [], []>} : vector<16x16xf32>, vector<16x16xf32>, vector<16x16xf32> -> vector<16x16xf32>
    %cst_80 = arith.constant 2.500000e-01 : f32
    %190 = vector.broadcast %cst_80 : f32 to vector<16x16xf32>
    %191 = arith.mulf %189, %190 : vector<16x16xf32>
    %192 = arith.addf %191, %34 : vector<16x16xf32>
    %cst_81 = arith.constant dense<0xFF800000> : vector<16xf32>
    %193 = vector.multi_reduction <maximumf>, %192, %cst_81 [1] : vector<16x16xf32> to vector<16xf32>
    %194 = vector.shape_cast %193 : vector<16xf32> to vector<16x1xf32>
    %195 = vector.broadcast %194 : vector<16x1xf32> to vector<16x16xf32>
    %196 = arith.subf %192, %195 : vector<16x16xf32>
    %197 = math.exp %196 : vector<16x16xf32>
    %cst_82 = arith.constant dense<0.000000e+00> : vector<16xf32>
    %198 = vector.multi_reduction <add>, %197, %cst_82 [1] : vector<16x16xf32> to vector<16xf32>
    %199 = vector.shape_cast %198 : vector<16xf32> to vector<16x1xf32>
    %200 = tpu.reciprocal %199 {approx = true} : vector<16x1xf32> -> vector<16x1xf32>
    %201 = vector.broadcast %200 : vector<16x1xf32> to vector<16x16xf32>
    %202 = arith.mulf %197, %201 : vector<16x16xf32>
    %cst_83 = arith.constant dense<0.000000e+00> : vector<16x16xf32>
    %203 = tpu.matmul %202, %188, %cst_83 {dimension_numbers = #tpu.dot_dimension_numbers<[1], [0], [0], [1], [0, 0, 1, 1], [], []>} : vector<16x16xf32>, vector<16x16xf32>, vector<16x16xf32> -> vector<16x16xf32>
    %c704 = arith.constant 704 : index
    %c0_84 = arith.constant 0 : index
    %204 = vector.load %arg2[%c704, %c0_84] : memref<1088x128xf32, #tpu.memory_space<vmem>>, vector<16x32xf32>
    %cst_85 = arith.constant dense<0.000000e+00> : vector<16x32xf32>
    %205 = tpu.matmul %203, %204, %cst_85 {dimension_numbers = #tpu.dot_dimension_numbers<[1], [0], [0], [1], [0, 0, 1, 1], [], []>} : vector<16x16xf32>, vector<16x32xf32>, vector<16x32xf32> -> vector<16x32xf32>
    %206 = arith.addf %173, %205 : vector<16x32xf32>
    %c720 = arith.constant 720 : index
    %c0_86 = arith.constant 0 : index
    %207 = vector.load %arg2[%c720, %c0_86] : memref<1088x128xf32, #tpu.memory_space<vmem>>, vector<32x16xf32>
    %cst_87 = arith.constant dense<0.000000e+00> : vector<16x16xf32>
    %208 = tpu.matmul %172, %207, %cst_87 {dimension_numbers = #tpu.dot_dimension_numbers<[1], [0], [0], [1], [0, 0, 1, 1], [], []>} : vector<16x32xf32>, vector<32x16xf32>, vector<16x16xf32> -> vector<16x16xf32>
    %c816 = arith.constant 816 : index
    %c0_88 = arith.constant 0 : index
    %209 = vector.load %arg2[%c816, %c0_88] : memref<1088x128xf32, #tpu.memory_space<vmem>>, vector<1x16xf32>
    %210 = vector.broadcast %209 : vector<1x16xf32> to vector<16x16xf32>
    %211 = arith.addf %208, %210 : vector<16x16xf32>
    %c752 = arith.constant 752 : index
    %c0_89 = arith.constant 0 : index
    %212 = vector.load %arg2[%c752, %c0_89] : memref<1088x128xf32, #tpu.memory_space<vmem>>, vector<32x16xf32>
    %cst_90 = arith.constant dense<0.000000e+00> : vector<16x16xf32>
    %213 = tpu.matmul %172, %212, %cst_90 {dimension_numbers = #tpu.dot_dimension_numbers<[1], [0], [0], [1], [0, 0, 1, 1], [], []>} : vector<16x32xf32>, vector<32x16xf32>, vector<16x16xf32> -> vector<16x16xf32>
    %c824 = arith.constant 824 : index
    %c0_91 = arith.constant 0 : index
    %214 = vector.load %arg2[%c824, %c0_91] : memref<1088x128xf32, #tpu.memory_space<vmem>>, vector<1x16xf32>
    %215 = vector.broadcast %214 : vector<1x16xf32> to vector<16x16xf32>
    %216 = arith.addf %213, %215 : vector<16x16xf32>
    %c784 = arith.constant 784 : index
    %c0_92 = arith.constant 0 : index
    %217 = vector.load %arg2[%c784, %c0_92] : memref<1088x128xf32, #tpu.memory_space<vmem>>, vector<32x16xf32>
    %cst_93 = arith.constant dense<0.000000e+00> : vector<16x16xf32>
    %218 = tpu.matmul %172, %217, %cst_93 {dimension_numbers = #tpu.dot_dimension_numbers<[1], [0], [0], [1], [0, 0, 1, 1], [], []>} : vector<16x32xf32>, vector<32x16xf32>, vector<16x16xf32> -> vector<16x16xf32>
    %c832 = arith.constant 832 : index
    %c0_94 = arith.constant 0 : index
    %219 = vector.load %arg2[%c832, %c0_94] : memref<1088x128xf32, #tpu.memory_space<vmem>>, vector<1x16xf32>
    %220 = vector.broadcast %219 : vector<1x16xf32> to vector<16x16xf32>
    %221 = arith.addf %218, %220 : vector<16x16xf32>
    %cst_95 = arith.constant dense<0.000000e+00> : vector<16x16xf32>
    %222 = tpu.matmul %211, %216, %cst_95 {dimension_numbers = #tpu.dot_dimension_numbers<[1], [1], [0], [0], [0, 0, 1, 0], [], []>} : vector<16x16xf32>, vector<16x16xf32>, vector<16x16xf32> -> vector<16x16xf32>
    %cst_96 = arith.constant 2.500000e-01 : f32
    %223 = vector.broadcast %cst_96 : f32 to vector<16x16xf32>
    %224 = arith.mulf %222, %223 : vector<16x16xf32>
    %225 = arith.addf %224, %34 : vector<16x16xf32>
    %cst_97 = arith.constant dense<0xFF800000> : vector<16xf32>
    %226 = vector.multi_reduction <maximumf>, %225, %cst_97 [1] : vector<16x16xf32> to vector<16xf32>
    %227 = vector.shape_cast %226 : vector<16xf32> to vector<16x1xf32>
    %228 = vector.broadcast %227 : vector<16x1xf32> to vector<16x16xf32>
    %229 = arith.subf %225, %228 : vector<16x16xf32>
    %230 = math.exp %229 : vector<16x16xf32>
    %cst_98 = arith.constant dense<0.000000e+00> : vector<16xf32>
    %231 = vector.multi_reduction <add>, %230, %cst_98 [1] : vector<16x16xf32> to vector<16xf32>
    %232 = vector.shape_cast %231 : vector<16xf32> to vector<16x1xf32>
    %233 = tpu.reciprocal %232 {approx = true} : vector<16x1xf32> -> vector<16x1xf32>
    %234 = vector.broadcast %233 : vector<16x1xf32> to vector<16x16xf32>
    %235 = arith.mulf %230, %234 : vector<16x16xf32>
    %cst_99 = arith.constant dense<0.000000e+00> : vector<16x16xf32>
    %236 = tpu.matmul %235, %221, %cst_99 {dimension_numbers = #tpu.dot_dimension_numbers<[1], [0], [0], [1], [0, 0, 1, 1], [], []>} : vector<16x16xf32>, vector<16x16xf32>, vector<16x16xf32> -> vector<16x16xf32>
    %c840 = arith.constant 840 : index
    %c0_100 = arith.constant 0 : index
    %237 = vector.load %arg2[%c840, %c0_100] : memref<1088x128xf32, #tpu.memory_space<vmem>>, vector<16x32xf32>
    %cst_101 = arith.constant dense<0.000000e+00> : vector<16x32xf32>
    %238 = tpu.matmul %236, %237, %cst_101 {dimension_numbers = #tpu.dot_dimension_numbers<[1], [0], [0], [1], [0, 0, 1, 1], [], []>} : vector<16x16xf32>, vector<16x32xf32>, vector<16x32xf32> -> vector<16x32xf32>
    %239 = arith.addf %206, %238 : vector<16x32xf32>
    %c856 = arith.constant 856 : index
    %c0_102 = arith.constant 0 : index
    %240 = vector.load %arg2[%c856, %c0_102] : memref<1088x128xf32, #tpu.memory_space<vmem>>, vector<1x32xf32>
    %241 = vector.broadcast %240 : vector<1x32xf32> to vector<16x32xf32>
    %242 = arith.addf %239, %241 : vector<16x32xf32>
    %243 = arith.addf %172, %242 : vector<16x32xf32>
    %c864 = arith.constant 864 : index
    %c0_103 = arith.constant 0 : index
    %244 = vector.load %arg2[%c864, %c0_103] : memref<1088x128xf32, #tpu.memory_space<vmem>>, vector<1x32xf32>
    %c872 = arith.constant 872 : index
    %c0_104 = arith.constant 0 : index
    %245 = vector.load %arg2[%c872, %c0_104] : memref<1088x128xf32, #tpu.memory_space<vmem>>, vector<1x32xf32>
    %cst_105 = arith.constant dense<0.000000e+00> : vector<16xf32>
    %246 = vector.multi_reduction <add>, %243, %cst_105 [1] : vector<16x32xf32> to vector<16xf32>
    %247 = vector.shape_cast %246 : vector<16xf32> to vector<16x1xf32>
    %cst_106 = arith.constant 3.200000e+01 : f32
    %248 = vector.broadcast %cst_106 : f32 to vector<16x1xf32>
    %249 = arith.divf %247, %248 : vector<16x1xf32>
    %250 = vector.broadcast %249 : vector<16x1xf32> to vector<16x32xf32>
    %251 = arith.subf %243, %250 : vector<16x32xf32>
    %252 = arith.mulf %251, %251 : vector<16x32xf32>
    %cst_107 = arith.constant dense<0.000000e+00> : vector<16xf32>
    %253 = vector.multi_reduction <add>, %252, %cst_107 [1] : vector<16x32xf32> to vector<16xf32>
    %254 = vector.shape_cast %253 : vector<16xf32> to vector<16x1xf32>
    %cst_108 = arith.constant 3.200000e+01 : f32
    %255 = vector.broadcast %cst_108 : f32 to vector<16x1xf32>
    %256 = arith.divf %254, %255 : vector<16x1xf32>
    %257 = vector.broadcast %249 : vector<16x1xf32> to vector<16x32xf32>
    %258 = arith.subf %243, %257 : vector<16x32xf32>
    %cst_109 = arith.constant 9.99999996E-13 : f32
    %259 = vector.broadcast %cst_109 : f32 to vector<16x1xf32>
    %260 = arith.addf %256, %259 : vector<16x1xf32>
    %261 = math.rsqrt %260 : vector<16x1xf32>
    %262 = vector.broadcast %261 : vector<16x1xf32> to vector<16x32xf32>
    %263 = arith.mulf %258, %262 : vector<16x32xf32>
    %264 = vector.broadcast %244 : vector<1x32xf32> to vector<16x32xf32>
    %265 = arith.mulf %263, %264 : vector<16x32xf32>
    %266 = vector.broadcast %245 : vector<1x32xf32> to vector<16x32xf32>
    %267 = arith.addf %265, %266 : vector<16x32xf32>
    %c880 = arith.constant 880 : index
    %c0_110 = arith.constant 0 : index
    %268 = vector.load %arg2[%c880, %c0_110] : memref<1088x128xf32, #tpu.memory_space<vmem>>, vector<32x64xf32>
    %cst_111 = arith.constant dense<0.000000e+00> : vector<16x64xf32>
    %269 = tpu.matmul %267, %268, %cst_111 {dimension_numbers = #tpu.dot_dimension_numbers<[1], [0], [0], [1], [0, 0, 1, 1], [], []>} : vector<16x32xf32>, vector<32x64xf32>, vector<16x64xf32> -> vector<16x64xf32>
    %c912 = arith.constant 912 : index
    %c0_112 = arith.constant 0 : index
    %270 = vector.load %arg2[%c912, %c0_112] : memref<1088x128xf32, #tpu.memory_space<vmem>>, vector<1x64xf32>
    %271 = vector.broadcast %270 : vector<1x64xf32> to vector<16x64xf32>
    %272 = arith.addf %269, %271 : vector<16x64xf32>
    %cst_113 = arith.constant 5.000000e-01 : f32
    %273 = vector.broadcast %cst_113 : f32 to vector<16x64xf32>
    %274 = arith.mulf %273, %272 : vector<16x64xf32>
    %cst_114 = arith.constant 0.707106769 : f32
    %275 = vector.broadcast %cst_114 : f32 to vector<16x64xf32>
    %276 = arith.mulf %272, %275 : vector<16x64xf32>
    %277 = math.erf %276 : vector<16x64xf32>
    %cst_115 = arith.constant 1.000000e+00 : f32
    %278 = vector.broadcast %cst_115 : f32 to vector<16x64xf32>
    %279 = arith.addf %278, %277 : vector<16x64xf32>
    %280 = arith.mulf %274, %279 : vector<16x64xf32>
    %c920 = arith.constant 920 : index
    %c0_116 = arith.constant 0 : index
    %281 = vector.load %arg2[%c920, %c0_116] : memref<1088x128xf32, #tpu.memory_space<vmem>>, vector<64x32xf32>
    %cst_117 = arith.constant dense<0.000000e+00> : vector<16x32xf32>
    %282 = tpu.matmul %280, %281, %cst_117 {dimension_numbers = #tpu.dot_dimension_numbers<[1], [0], [0], [1], [0, 0, 1, 1], [], []>} : vector<16x64xf32>, vector<64x32xf32>, vector<16x32xf32> -> vector<16x32xf32>
    %c984 = arith.constant 984 : index
    %c0_118 = arith.constant 0 : index
    %283 = vector.load %arg2[%c984, %c0_118] : memref<1088x128xf32, #tpu.memory_space<vmem>>, vector<1x32xf32>
    %284 = vector.broadcast %283 : vector<1x32xf32> to vector<16x32xf32>
    %285 = arith.addf %282, %284 : vector<16x32xf32>
    %286 = arith.addf %267, %285 : vector<16x32xf32>
    %c992 = arith.constant 992 : index
    %c0_119 = arith.constant 0 : index
    %287 = vector.load %arg2[%c992, %c0_119] : memref<1088x128xf32, #tpu.memory_space<vmem>>, vector<1x32xf32>
    %c1000 = arith.constant 1000 : index
    %c0_120 = arith.constant 0 : index
    %288 = vector.load %arg2[%c1000, %c0_120] : memref<1088x128xf32, #tpu.memory_space<vmem>>, vector<1x32xf32>
    %cst_121 = arith.constant dense<0.000000e+00> : vector<16xf32>
    %289 = vector.multi_reduction <add>, %286, %cst_121 [1] : vector<16x32xf32> to vector<16xf32>
    %290 = vector.shape_cast %289 : vector<16xf32> to vector<16x1xf32>
    %cst_122 = arith.constant 3.200000e+01 : f32
    %291 = vector.broadcast %cst_122 : f32 to vector<16x1xf32>
    %292 = arith.divf %290, %291 : vector<16x1xf32>
    %293 = vector.broadcast %292 : vector<16x1xf32> to vector<16x32xf32>
    %294 = arith.subf %286, %293 : vector<16x32xf32>
    %295 = arith.mulf %294, %294 : vector<16x32xf32>
    %cst_123 = arith.constant dense<0.000000e+00> : vector<16xf32>
    %296 = vector.multi_reduction <add>, %295, %cst_123 [1] : vector<16x32xf32> to vector<16xf32>
    %297 = vector.shape_cast %296 : vector<16xf32> to vector<16x1xf32>
    %cst_124 = arith.constant 3.200000e+01 : f32
    %298 = vector.broadcast %cst_124 : f32 to vector<16x1xf32>
    %299 = arith.divf %297, %298 : vector<16x1xf32>
    %300 = vector.broadcast %292 : vector<16x1xf32> to vector<16x32xf32>
    %301 = arith.subf %286, %300 : vector<16x32xf32>
    %cst_125 = arith.constant 9.99999996E-13 : f32
    %302 = vector.broadcast %cst_125 : f32 to vector<16x1xf32>
    %303 = arith.addf %299, %302 : vector<16x1xf32>
    %304 = math.rsqrt %303 : vector<16x1xf32>
    %305 = vector.broadcast %304 : vector<16x1xf32> to vector<16x32xf32>
    %306 = arith.mulf %301, %305 : vector<16x32xf32>
    %307 = vector.broadcast %287 : vector<1x32xf32> to vector<16x32xf32>
    %308 = arith.mulf %306, %307 : vector<16x32xf32>
    %309 = vector.broadcast %288 : vector<1x32xf32> to vector<16x32xf32>
    %310 = arith.addf %308, %309 : vector<16x32xf32>
    %c152 = arith.constant 152 : index
    %c0_126 = arith.constant 0 : index
    %311 = vector.load %arg2[%c152, %c0_126] : memref<1088x128xf32, #tpu.memory_space<vmem>>, vector<2x16xf32>
    %cst_127 = arith.constant dense<0.000000e+00> : vector<2x32xf32>
    %312 = tpu.matmul %311, %310, %cst_127 {dimension_numbers = #tpu.dot_dimension_numbers<[1], [0], [0], [1], [0, 0, 1, 1], [], []>} : vector<2x16xf32>, vector<16x32xf32>, vector<2x32xf32> -> vector<2x32xf32>
    %c1008 = arith.constant 1008 : index
    %c0_128 = arith.constant 0 : index
    %313 = vector.load %arg2[%c1008, %c0_128] : memref<1088x128xf32, #tpu.memory_space<vmem>>, vector<32x32xf32>
    %cst_129 = arith.constant dense<0.000000e+00> : vector<2x32xf32>
    %314 = tpu.matmul %312, %313, %cst_129 {dimension_numbers = #tpu.dot_dimension_numbers<[1], [0], [0], [1], [0, 0, 1, 1], [], []>} : vector<2x32xf32>, vector<32x32xf32>, vector<2x32xf32> -> vector<2x32xf32>
    %c1040 = arith.constant 1040 : index
    %c0_130 = arith.constant 0 : index
    %315 = vector.load %arg2[%c1040, %c0_130] : memref<1088x128xf32, #tpu.memory_space<vmem>>, vector<1x32xf32>
    %316 = vector.broadcast %315 : vector<1x32xf32> to vector<2x32xf32>
    %317 = arith.addf %314, %316 : vector<2x32xf32>
    %318 = math.tanh %317 : vector<2x32xf32>
    %c1048 = arith.constant 1048 : index
    %c0_131 = arith.constant 0 : index
    %319 = vector.load %arg2[%c1048, %c0_131] : memref<1088x128xf32, #tpu.memory_space<vmem>>, vector<32x3xf32>
    %cst_132 = arith.constant dense<0.000000e+00> : vector<2x3xf32>
    %320 = tpu.matmul %318, %319, %cst_132 {dimension_numbers = #tpu.dot_dimension_numbers<[1], [0], [0], [1], [0, 0, 1, 1], [], []>} : vector<2x32xf32>, vector<32x3xf32>, vector<2x3xf32> -> vector<2x3xf32>
    %c1080 = arith.constant 1080 : index
    %c0_133 = arith.constant 0 : index
    %321 = vector.load %arg2[%c1080, %c0_133] : memref<1088x128xf32, #tpu.memory_space<vmem>>, vector<1x3xf32>
    %322 = vector.broadcast %321 : vector<1x3xf32> to vector<2x3xf32>
    %323 = arith.addf %320, %322 : vector<2x3xf32>
    %c0_134 = arith.constant 0 : index
    %c0_135 = arith.constant 0 : index
    %324 = vector.load %arg3[%c0_134, %c0_135] : memref<2x3xf32, #tpu.memory_space<vmem>>, vector<2x3xf32>
    tpu.vector_store %arg3[%c0_134, %c0_135], %323 {strides = array<i32>} : memref<2x3xf32, #tpu.memory_space<vmem>>, vector<2x3xf32>,
    return
  }
  func.func @transform_0(%arg0: i32) -> (i32, i32) {
    %c0_i32 = arith.constant 0 : i32
    %c0_i32_0 = arith.constant 0 : i32
    %c0_i32_1 = arith.constant 0 : i32
    return %c0_i32, %c0_i32_0 : i32, i32
  }
  func.func @transform_1(%arg0: i32) -> (i32, i32) {
    %c0_i32 = arith.constant 0 : i32
    %c0_i32_0 = arith.constant 0 : i32
    %c0_i32_1 = arith.constant 0 : i32
    return %c0_i32, %c0_i32_0 : i32, i32
  }
  func.func @transform_2(%arg0: i32) -> (i32, i32) {
    %c0_i32 = arith.constant 0 : i32
    %c0_i32_0 = arith.constant 0 : i32
    %c0_i32_1 = arith.constant 0 : i32
    return %c0_i32, %c0_i32_0 : i32, i32
  }
}

</mosaic_0001>

<bundles_post_ra>
// kernel: bert_forward.1
= control target key start
LH: loop header
LB: loop body
LE: loop exit
PB: predicated region body
PF: predicated region fallthrough
CT: control target
= control target key end

     0   :  { %vm50_vm0 = vcmask 1043456   ;;  %v1835_v2 = vmov 0   ;;  %s2516_s0 = inlined_call_operand.vmem [shape: s32[16,1], index: 0, kind: input, shape index: {}]   ;;  %s2517_s1 = inlined_call_operand.vmem [shape: f32[1088,128], index: 1, kind: input, shape index: {}]   ;;  %s2518_s2 = inlined_call_operand.hbm [shape: f32[2,3], index: 2, kind: output, shape index: {}]  }
   0x1   :  { %v12_v0 = vld [vmem:[%s2516_s0] sm:$0xff]  ;;  %1714 = vset.pattern.permute.xlu0 %v1835_v2  ;;  %v39_v3 = vld [vmem:[%s2517_s1 + $0x58] sm:$0xff]  ;;  %v38_v4 = vld [vmem:[%s2517_s1 + $0x50] sm:$0xff] }
   0x2   :  { %v40_v1 = vld [vmem:[%s2517_s1 + $0x60] sm:$0xf]  ;;  %17 = vperm.xlu0 %1714, %v12_v0   ;;  %v37_v5 = vld [vmem:[%s2517_s1 + $0x48] sm:$0xff]  ;;  %v35_v8 = vld [vmem:[%s2517_s1 + $0x38] sm:$0xff] }
   0x3   :  { %1636 = vmatpush.msk.msra.mxu0 %vm50_vm0, %v40_v1  ;;  %v36_v6 = vld [vmem:[%s2517_s1 + $0x40] sm:$0xff]  ;;  %v13_v7 = vld [vmem:[%s2516_s0 + $0x8] sm:$0xff]  ;;  %v34_v9 = vld [vmem:[%s2517_s1 + $0x30] sm:$0xff] }
   0x4   :  { %v33_v10 = vld [vmem:[%s2517_s1 + $0x28] sm:$0xff]  ;;  %v32_v11 = vld [vmem:[%s2517_s1 + $0x20] sm:$0xff] }
   0x5   :  { %58 = vmatpush.msra.mxu0 %v39_v3 }
   0x7   :  { %59 = vmatpush.msra.mxu0 %v38_v4 }
   0x9   :  { %60 = vmatpush.msra.mxu0 %v37_v5 }
   0xa   :  { %20 = vperm.xlu0 %1714, %v13_v7  }
   0xb   :  { %61 = vmatpush.msra.mxu0 %v36_v6 }
   0xd   :  { %62 = vmatpush.msra.mxu0 %v35_v8 }
   0xf   :  { %63 = vmatpush.msra.mxu0 %v34_v9 }
  0x10   :  { %7 = vsyncpa [#allocation3], 0  ;;  %v31_v12 = vld [vmem:[%s2517_s1 + $0x18] sm:$0xff]  ;;  %v30_v13 = vld [vmem:[%s2517_s1 + $0x10] sm:$0xff]  ;;  %v14_v16 = vlaneseq  ;;  %vm43_vm1 = vcmask 818176   ;;  %v1836_v19 = vmov 0.0  }
  0x11   :  { %64 = vmatpush.msra.mxu0 %v33_v10  ;;  %v29_v14 = vld [vmem:[%s2517_s1 + $0x8] sm:$0xff]  ;;  %v28_v15 = vld [vmem:[%s2517_s1] sm:$0xff]  ;;  %vm79_vm4 = vcmask 261120   ;;  %v42_v27 = vld [vmem:[%s2517_s1 + $0x70] sm:$0xff]  ;;  %v1837_v31 = vmov 32.0   ;;  %vm232_vm12 = vcmask 130048  }
  0x12   :  { %v15_v17 = vand.u32 127, %v14_v16  ;;  %v41_v23 = vld [vmem:[%s2517_s1 + $0x68] sm:$0xff]  ;;  %1745 = vrcp.f32 %v1837_v31  ;;  %v142_v48 = vld [vmem:[%s2517_s1 + $0xb8] sm:$0xff]  ;;  %v141_v51 = vld [vmem:[%s2517_s1 + $0xb0] sm:$0xff]  ;;  %s1838_s24 = smov [#allocation2]   ;;  %s1625_s28 = sshll.u32 %s2518_s2, 4  ;;  %s1626_s28 = int_to_ptr.hbm [resolvable:$true] %s1625_s28 }
  0x13   :  { %65 = vmatpush.msra.mxu0 %v32_v11  ;;  %v177_v49 = vld [vmem:[%s2517_s1 + $0xd8] sm:$0xff]  ;;  %163 = vmatpush.msra.mxu1 %v142_v48  ;;  %v176_v52 = vld [vmem:[%s2517_s1 + $0xd0] sm:$0xff]  ;;  %v140_v54 = vld [vmem:[%s2517_s1 + $0xa8] sm:$0xff]  ;;  %s1623_s25 = sshll.u32 %s1838_s24, 4  ;;  %s1624_s25 = int_to_ptr.vmem [resolvable:$true] %s1623_s25 }
  0x14   :  { %v206_v50 = vld [vmem:[%s2517_s1 + $0xf8] sm:$0xff]  ;;  %192 = vmatpush.msra.mxu2 %v177_v49  ;;  %v205_v53 = vld [vmem:[%s2517_s1 + $0xf0] sm:$0xff]  ;;  %v175_v55 = vld [vmem:[%s2517_s1 + $0xc8] sm:$0xff] }
  0x15   :  { %66 = vmatpush.msra.mxu0 %v31_v12  ;;  %221 = vmatpush.msra.mxu3 %v206_v50  ;;  %v204_v56 = vld [vmem:[%s2517_s1 + $0xe8] sm:$0xff]  ;;  %v139_v57 = vld [vmem:[%s2517_s1 + $0xa0] sm:$0xff]  ;;  %v327_v0 = vld [vmem:[%s2517_s1 + $0x138] sm:$0xff] }
  0x16   :  { %164 = vmatpush.msra.mxu1 %v141_v51  ;;  %193 = vmatpush.msra.mxu2 %v176_v52  ;;  %v174_v58 = vld [vmem:[%s2517_s1 + $0xc0] sm:$0xff]  ;;  %v326_v2 = vld [vmem:[%s2517_s1 + $0x130] sm:$0xff]  ;;  %v325_v4 = vld [vmem:[%s2517_s1 + $0x128] sm:$0xff] }
  0x17   :  { %67 = vmatpush.msra.mxu0 %v30_v13  ;;  %222 = vmatpush.msra.mxu3 %v205_v53  ;;  %v203_v59 = vld [vmem:[%s2517_s1 + $0xe0] sm:$0xff]  ;;  %v1719_v31 = vld [vmem:[%s2517_s1 + $0x110] ss:$0 sm:$0xff]  ;;  %v2031_v49 = vld [vmem:[%s2517_s1 + $0x88] sm:$0xff] }
  0x18   :  { %v1746_v32 = vpop.eup %1745  ;;  %165 = vmatpush.msra.mxu1 %v140_v54  ;;  %194 = vmatpush.msra.mxu2 %v175_v55  ;;  %v328_v63 = vld [vmem:[%s2517_s1 + $0x140] sm:$0xff]  ;;  %v2038_v54 = vld [vmem:[%s2517_s1 + $0x90] sm:$0xff] }
  0x19   :  { %68 = vmatpush.msra.mxu0 %v29_v14  ;;  %v87_v33 = vmul.f32 32.0, %v1746_v32  ;;  %vm91_vm5 = vweird.f32 %v1746_v32  ;;  %223 = vmatpush.msra.mxu3 %v204_v56  ;;  %v1715_v14 = vld [vmem:[%s2517_s1 + $0x78] ss:$0 sm:$0xff] }
  0x1a   :  { %166 = vmatpush.msra.mxu1 %v139_v57  ;;  %195 = vmatpush.msra.mxu2 %v174_v58 }
  0x1b   :  { %69 = vmatpush.msra.mxu0 %v28_v15  ;;  %v88_v34 = vsub.f32 1.0, %v87_v33  ;;  %224 = vmatpush.msra.mxu3 %v203_v59  ;;  %v1721_v59 = vld [vmem:[%s2517_s1 + $0x190] ss:$0 sm:$0xff] }
  0x1d   :  { %v89_v35 = vmul.f32 %v1746_v32, %v88_v34  ;;  %343 = vmatpush.msrb.mxu3 %v328_v63  ;;  %v1720_v63 = vld [vmem:[%s2517_s1 + $0x188] ss:$0 sm:$0xff] }
  0x1f   :  { %v90_v36 = vadd.f32 %v1746_v32, %v89_v35  ;;  %344 = vmatpush.msrb.mxu3 %v327_v0 }
  0x21   :  { %v1907_v37 = vsel %vm91_vm5, %v1746_v32, %v90_v36  ;;  %345 = vmatpush.msrb.mxu3 %v326_v2 }
  0x23   :  { %346 = vmatpush.msrb.mxu3 %v325_v4 }
  0x74   :  { %v18_v18 = vpop.permute.xlu0 %17 }
  0x75   :  { %vm22_vm2 = vcmp.eq.s32.totalorder %v18_v18, %v15_v17 }
  0x76   :  { %v1634_v20 = vsel %vm22_vm2, 1.0, %v1836_v19 }
  0x77   :  { %1637 = vmatmul.msk.f32.vlgmr.msra.gmra.mxu0 %vm43_vm1, %v1634_v20 }
  0x7c   :  { %v21_v21 = vpop.permute.xlu0 %20 }
  0x7d   :  { %vm23_vm3 = vcmp.eq.s32.totalorder %v21_v21, %v15_v17  ;;  %v1716_v17 = vld [vmem:[%s2517_s1 + $0x80] ss:$0 sm:$0xff] }
  0x7e   :  { %v1635_v22 = vsel %vm23_vm3, 1.0, %v1836_v19 }
  0x7f   :  { %1638 = vmatmul.msk.f32.gmra.mxu0 %vm43_vm1, %v1635_v22 }
  0xf4   :  { %v71_v24 = vpop.f32.mrf.mxu0 }
  0xf5   :  { %v72_v25 = vadd.f32 %v71_v24, %v41_v23 }
  0xf7   :  { %v80_v26 = vsel %vm79_vm4, %v72_v25, 0.0 }
  0xf8   :  { %81 = vadd.xlane.f32.xlu1 %v80_v26 }
  0xfc   :  { %v74_v28 = vpop.f32.mrf.mxu0 }
  0xfd   :  { %v75_v29 = vadd.f32 %v74_v28, %v42_v27 }
  0xff   :  { %v83_v30 = vsel %vm79_vm4, %v75_v29, 0.0 }
 0x100   :  { %84 = vadd.xlane.f32.xlu1 %v83_v30  ;;  %v1718_v30 = vld [vmem:[%s2517_s1 + $0x108] ss:$0 sm:$0xff] }
 0x16b   :  { %v82_v38 = vpop.xlane.xlu1 %81 }
 0x16c   :  { %v93_v39 = vmul.f32 %v1907_v37, %v82_v38  ;;  %v1717_v38 = vld [vmem:[%s2517_s1 + $0x100] ss:$0 sm:$0xff] }
 0x16e   :  { %v1910_v40 = vsub.f32 %v72_v25, %v93_v39 }
 0x170   :  { %v97_v41 = vmul.f32 %v1910_v40, %v1910_v40 }
 0x172   :  { %v99_v42 = vsel %vm79_vm4, %v97_v41, 0.0  ;;  %v357_v41 = vld [vmem:[%s2517_s1 + $0x160] sm:$0xff] }
 0x173   :  { %100 = vadd.xlane.f32.xlu2 %v99_v42  ;;  %v85_v43 = vpop.xlane.xlu1 %84 }
 0x174   :  { %v94_v44 = vmul.f32 %v1907_v37, %v85_v43  ;;  %v356_v43 = vld [vmem:[%s2517_s1 + $0x158] sm:$0xff] }
 0x176   :  { %v1916_v45 = vsub.f32 %v75_v29, %v94_v44  ;;  %v355_v44 = vld [vmem:[%s2517_s1 + $0x150] sm:$0xff] }
 0x178   :  { %v98_v46 = vmul.f32 %v1916_v45, %v1916_v45 }
 0x17a   :  { %v102_v47 = vsel %vm79_vm4, %v98_v46, 0.0 }
 0x17b   :  { %103 = vadd.xlane.f32.xlu2 %v102_v47 }
 0x1e6   :  { %v101_v60 = vpop.xlane.xlu2 %100 }
 0x1e7   :  { %v105_v61 = vmul.f32 %v101_v60, %v1907_v37 }
 0x1e9   :  { %v107_v62 = vadd.f32 1e-12, %v105_v61 }
 0x1eb   :  { %1747 = vrsqrt.f32 %v107_v62  ;;  %vm115_vm7 = vweird.f32 %v107_v62 }
 0x1ee   :  { %v104_v1 = vpop.xlane.xlu2 %103 }
 0x1ef   :  { %v106_v3 = vmul.f32 %v104_v1, %v1907_v37 }
 0x1f1   :  { %v1748_v5 = vpop.eup %1747  ;;  %v108_v6 = vadd.f32 1e-12, %v106_v3 }
 0x1f2   :  { %v110_v7 = vmul.f32 %v1748_v5, %v107_v62  ;;  %vm116_vm6 = vweird.f32 %v1748_v5 }
 0x1f3   :  { %1749 = vrsqrt.f32 %v108_v6  ;;  %vm117_vm8 = vmor %vm115_vm7, %vm116_vm6  ;;  %vm125_vm10 = vweird.f32 %v108_v6 }
 0x1f4   :  { %v111_v8 = vmul.f32 %v1748_v5, %v110_v7 }
 0x1f6   :  { %v112_v9 = vmul.f32 0.5, %v111_v8 }
 0x1f8   :  { %v113_v10 = vsub.f32 1.5, %v112_v9 }
 0x1f9   :  { %v1750_v11 = vpop.eup %1749 }
 0x1fa   :  { %v114_v12 = vmul.f32 %v1748_v5, %v113_v10  ;;  %v120_v13 = vmul.f32 %v1750_v11, %v108_v6  ;;  %vm126_vm9 = vweird.f32 %v1750_v11 }
 0x1fb   :  { %vm127_vm11 = vmor %vm125_vm10, %vm126_vm9  ;;  %vm753_vm10 = vcmask 523264  }
 0x1fc   :  { %v118_v15 = vsel %vm117_vm8, %v1748_v5, %v114_v12  ;;  %v121_v16 = vmul.f32 %v1750_v11, %v120_v13 }
 0x1fd   :  { %v129_v18 = vmul.f32 %v118_v15, %v1910_v40 }
 0x1fe   :  { %v122_v19 = vmul.f32 0.5, %v121_v16 }
 0x1ff   :  { %v132_v20 = vmul.f32 %v1715_v14, %v129_v18 }
 0x200   :  { %v123_v21 = vsub.f32 1.5, %v122_v19 }
 0x201   :  { %v1978_v22 = vadd.f32 %v1716_v17, %v132_v20 }
 0x202   :  { %v124_v23 = vmul.f32 %v1750_v11, %v123_v21 }
 0x203   :  { %1639 = vmatmul.msk.f32.vlgmr.msra.gmra.mxu1 %vm79_vm4, %v1978_v22  ;;  %1641 = vmatmul.msk.f32.vlgmr.msra.gmra.mxu2 %vm79_vm4, %v1978_v22 }
 0x204   :  { %v128_v24 = vsel %vm127_vm11, %v1750_v11, %v124_v23  ;;  %1643 = vmatmul.msk.f32.vlgmr.msra.gmra.mxu3 %vm79_vm4, %v1978_v22  ;;  %v386_v23 = vld [vmem:[%s2517_s1 + $0x180] sm:$0xff] }
 0x205   :  { %v130_v25 = vmul.f32 %v128_v24, %v1916_v45  ;;  %v354_v45 = vld [vmem:[%s2517_s1 + $0x148] sm:$0xff]  ;;  %v385_v24 = vld [vmem:[%s2517_s1 + $0x178] sm:$0xff] }
 0x207   :  { %v133_v26 = vmul.f32 %v1715_v14, %v130_v25  ;;  %v384_v25 = vld [vmem:[%s2517_s1 + $0x170] sm:$0xff] }
 0x209   :  { %v1987_v27 = vadd.f32 %v1716_v17, %v133_v26  ;;  %v383_v26 = vld [vmem:[%s2517_s1 + $0x168] sm:$0xff] }
 0x20b   :  { %1640 = vmatmul.msk.f32.gmra.mxu1 %vm79_vm4, %v1987_v27  ;;  %1642 = vmatmul.msk.f32.gmra.mxu2 %vm79_vm4, %v1987_v27 }
 0x20c   :  { %1644 = vmatmul.msk.f32.gmra.mxu3 %vm79_vm4, %v1987_v27 }
 0x214   :  { %1651 = vmatmul.msk.f32.vlgmr.msrb.gmra.mxu3 %vm79_vm4, %v1978_v22 }
 0x21c   :  { %1652 = vmatmul.msk.f32.gmra.mxu3 %vm79_vm4, %v1987_v27 }
 0x280   :  { %v168_v36 = vpop.f32.mrf.mxu1 }
 0x281   :  { %v169_v42 = vadd.f32 %v1717_v38, %v168_v36 }
 0x286   :  { %v197_v28 = vpop.f32.mrf.mxu2 }
 0x287   :  { %v226_v29 = vpop.f32.mrf.mxu3  ;;  %v198_v40 = vadd.f32 %v1718_v30, %v197_v28 }
 0x288   :  { %v227_v39 = vadd.f32 %v1719_v31, %v226_v29  ;;  %v171_v46 = vpop.f32.mrf.mxu1 }
 0x289   :  { %v172_v47 = vadd.f32 %v1717_v38, %v171_v46  ;;  %v323_v46 = vld [vmem:[%s2517_s1 + $0x118] sm:$0xff] }
 0x28e   :  { %v200_v32 = vpop.f32.mrf.mxu2 }
 0x28f   :  { %v201_v33 = vadd.f32 %v1718_v30, %v200_v32  ;;  %v229_v34 = vpop.f32.mrf.mxu3 }
 0x290   :  { %v230_v35 = vadd.f32 %v1719_v31, %v229_v34  ;;  %v324_v34 = vld [vmem:[%s2517_s1 + $0x120] sm:$0xff] }
 0x291   :  { %1645 = vmatpush.xpose.msk.msrb.mxu1 %vm232_vm12, %v201_v33 }
 0x292   :  { %314 = vmatpush.msrb.mxu2 %v230_v35 }
 0x294   :  { %315 = vmatpush.msrb.mxu2 %v227_v39 }
 0x295   :  { %1646 = vmatpush.xpose.msk.msrb.mxu1 %vm232_vm12, %v198_v40 }
 0x296   :  { %401 = vmatpush.msra.mxu2 %v386_v23 }
 0x297   :  { %v348_v62 = vpop.f32.mrf.mxu3 }
 0x298   :  { %1647 = vmatmul.msk.f32.vlgmr.msrb.gmra.mxu1 %vm232_vm12, %v169_v42  ;;  %v349_v1 = vadd.f32 %v1720_v63, %v348_v62  ;;  %402 = vmatpush.msra.mxu2 %v385_v24  ;;  %v503_v62 = vld [vmem:[%s2517_s1 + $0x1a8] sm:$0xff] }
 0x299   :  { %372 = vmatpush.msra.mxu1 %v357_v41 }
 0x29a   :  { %403 = vmatpush.msra.mxu2 %v384_v25  ;;  %v622_v25 = vld [vmem:[%s2517_s1 + $0x1d8] sm:$0xff] }
 0x29b   :  { %373 = vmatpush.msra.mxu1 %v356_v43 }
 0x29c   :  { %404 = vmatpush.msra.mxu2 %v383_v26  ;;  %v621_v26 = vld [vmem:[%s2517_s1 + $0x1d0] sm:$0xff] }
 0x29d   :  { %374 = vmatpush.msra.mxu1 %v355_v44 }
 0x29f   :  { %375 = vmatpush.msra.mxu1 %v354_v45  ;;  %v351_v2 = vpop.f32.mrf.mxu3 }
 0x2a0   :  { %1648 = vmatmul.msk.f32.gmra.mxu1 %vm232_vm12, %v172_v47  ;;  %v352_v3 = vadd.f32 %v1720_v63, %v351_v2  ;;  %v502_v63 = vld [vmem:[%s2517_s1 + $0x1a0] sm:$0xff] }
 0x2a1   :  { %524 = vmatpush.msrb.mxu1 %v503_v62 }
 0x2a3   :  { %525 = vmatpush.msrb.mxu1 %v502_v63 }
 0x2a8   :  { %1653 = vmatmul.msk.f32.vlgmr.msra.gmra.mxu1 %vm79_vm4, %v1978_v22 }
 0x2b0   :  { %1654 = vmatmul.msk.f32.gmra.mxu1 %vm79_vm4, %v1987_v27 }
 0x315   :  { %v262_v48 = vpop.f32.mrf.mxu1 }
 0x316   :  { %v268_v50 = vmul.f32 0.25, %v262_v48 }
 0x318   :  { %v270_v51 = vadd.f32 %v268_v50, %v2031_v49 }
 0x31a   :  { %v272_v52 = vsel %vm232_vm12, %v270_v51, -inf }
 0x31b   :  { %273 = vmax.xlane.f32.xlu0 %v272_v52 }
 0x31d   :  { %v265_v53 = vpop.f32.mrf.mxu1 }
 0x31e   :  { %v269_v55 = vmul.f32 0.25, %v265_v53 }
 0x320   :  { %v271_v56 = vadd.f32 %v269_v55, %v2038_v54 }
 0x322   :  { %v275_v57 = vsel %vm232_vm12, %v271_v56, -inf }
 0x323   :  { %276 = vmax.xlane.f32.xlu1 %v275_v57 }
 0x325   :  { %v377_v58 = vpop.f32.mrf.mxu1 }
 0x326   :  { %v378_v0 = vadd.f32 %v1721_v59, %v377_v58 }
 0x32d   :  { %v380_v60 = vpop.f32.mrf.mxu1 }
 0x32e   :  { %v381_v61 = vadd.f32 %v1721_v59, %v380_v60 }
 0x330   :  { %1657 = vmatpush.xpose.msk.msra.mxu3 %vm232_vm12, %v381_v61 }
 0x334   :  { %1658 = vmatpush.xpose.msk.msra.mxu3 %vm232_vm12, %v378_v0 }
 0x337   :  { %1659 = vmatmul.msk.f32.vlgmr.msra.gmra.mxu3 %vm232_vm12, %v349_v1 }
 0x33f   :  { %1660 = vmatmul.msk.f32.gmra.mxu3 %vm232_vm12, %v352_v3  ;;  %v1723_v3 = vld [vmem:[%s2517_s1 + $0x1b0] ss:$0 sm:$0xff] }
 0x38e   :  { %v274_v4 = vpop.xlane.xlu0 %273 }
 0x38f   :  { %v278_v5 = vsub.f32 %v270_v51, %v274_v4  ;;  %v1722_v51 = vld [vmem:[%s2517_s1 + $0x198] ss:$0 sm:$0xff] }
 0x391   :  { %v280_v6 = vmul.f32 1.442695, %v278_v5 }
 0x393   :  { %1751 = vpow2.f32 %v280_v6 }
 0x396   :  { %v277_v7 = vpop.xlane.xlu1 %276 }
 0x397   :  { %v279_v8 = vsub.f32 %v271_v56, %v277_v7 }
 0x399   :  { %v1752_v9 = vpop.eup %1751  ;;  %v282_v10 = vmul.f32 1.442695, %v279_v8 }
 0x39a   :  { %v284_v11 = vsel %vm232_vm12, %v1752_v9, 0.0 }
 0x39b   :  { %1753 = vpow2.f32 %v282_v10  ;;  %285 = vadd.xlane.f32.xlu2 %v284_v11 }
 0x3a1   :  { %v1754_v12 = vpop.eup %1753 }
 0x3a2   :  { %v287_v13 = vsel %vm232_vm12, %v1754_v12, 0.0 }
 0x3a3   :  { %288 = vadd.xlane.f32.xlu1 %v287_v13 }
 0x3ba   :  { %v441_v14 = vpop.f32.mrf.mxu3 }
 0x3bb   :  { %v447_v15 = vmul.f32 0.25, %v441_v14 }
 0x3bd   :  { %v449_v16 = vadd.f32 %v447_v15, %v2031_v49 }
 0x3bf   :  { %v451_v17 = vsel %vm232_vm12, %v449_v16, -inf }
 0x3c0   :  { %452 = vmax.xlane.f32.xlu2 %v451_v17 }
 0x3c2   :  { %v444_v18 = vpop.f32.mrf.mxu3 }
 0x3c3   :  { %v448_v19 = vmul.f32 0.25, %v444_v18 }
 0x3c5   :  { %v450_v20 = vadd.f32 %v448_v19, %v2038_v54 }
 0x3c7   :  { %v454_v21 = vsel %vm232_vm12, %v450_v20, -inf }
 0x3c8   :  { %455 = vmax.xlane.f32.xlu1 %v454_v21 }
 0x40e   :  { %v286_v28 = vpop.xlane.xlu2 %285 }
 0x40f   :  { %1755 = vrcp.f32 %v286_v28  ;;  %v620_v28 = vld [vmem:[%s2517_s1 + $0x1c8] sm:$0xff] }
 0x415   :  { %v1756_v29 = vpop.eup %1755 }
 0x416   :  { %v289_v30 = vpop.xlane.xlu1 %288  ;;  %v292_v31 = vmul.f32 %v1756_v29, %v1752_v9 }
 0x417   :  { %1757 = vrcp.f32 %v289_v30 }
 0x418   :  { %1649 = vmatmul.msk.f32.vlgmr.msrb.gmra.mxu2 %vm232_vm12, %v292_v31 }
 0x419   :  { %553 = vmatpush.msrb.mxu2 %v324_v34 }
 0x41b   :  { %554 = vmatpush.msrb.mxu2 %v323_v46 }
 0x41d   :  { %v1758_v32 = vpop.eup %1757 }
 0x41e   :  { %v293_v33 = vmul.f32 %v1758_v32, %v1754_v12 }
 0x420   :  { %1650 = vmatmul.msk.f32.gmra.mxu2 %vm232_vm12, %v293_v33 }
 0x428   :  { %1655 = vmatmul.msk.f32.vlgmr.msra.gmra.mxu2 %vm79_vm4, %v1978_v22 }
 0x430   :  { %1656 = vmatmul.msk.f32.gmra.mxu2 %vm79_vm4, %v1987_v27 }
 0x433   :  { %v453_v35 = vpop.xlane.xlu2 %452 }
 0x434   :  { %v457_v36 = vsub.f32 %v449_v16, %v453_v35 }
 0x436   :  { %v459_v38 = vmul.f32 1.442695, %v457_v36 }
 0x438   :  { %1759 = vpow2.f32 %v459_v38 }
 0x43b   :  { %v456_v39 = vpop.xlane.xlu1 %455 }
 0x43c   :  { %v458_v40 = vsub.f32 %v450_v20, %v456_v39 }
 0x43e   :  { %v1760_v41 = vpop.eup %1759  ;;  %v461_v42 = vmul.f32 1.442695, %v458_v40 }
 0x43f   :  { %v463_v43 = vsel %vm232_vm12, %v1760_v41, 0.0 }
 0x440   :  { %1761 = vpow2.f32 %v461_v42  ;;  %464 = vadd.xlane.f32.xlu2 %v463_v43 }
 0x446   :  { %v1762_v44 = vpop.eup %1761 }
 0x447   :  { %v466_v45 = vsel %vm232_vm12, %v1762_v44, 0.0 }
 0x448   :  { %467 = vadd.xlane.f32.xlu1 %v466_v45 }
 0x49b   :  { %v317_v47 = vpop.f32.mrf.mxu2 }
 0x49c   :  { %1665 = vmatmul.msk.f32.vlgmr.msrb.gmra.mxu2 %vm232_vm12, %v317_v47 }
 0x4a3   :  { %v320_v48 = vpop.f32.mrf.mxu2 }
 0x4a4   :  { %1666 = vmatmul.msk.f32.gmra.mxu2 %vm232_vm12, %v320_v48  ;;  %v1725_v48 = vld [vmem:[%s2517_s1 + $0x1c0] ss:$0 sm:$0xff] }
 0x4ab   :  { %v406_v50 = vpop.f32.mrf.mxu2 }
 0x4ac   :  { %v407_v56 = vadd.f32 %v1722_v51, %v406_v50 }
 0x4b3   :  { %v465_v52 = vpop.xlane.xlu2 %464  ;;  %v409_v53 = vpop.f32.mrf.mxu2 }
 0x4b4   :  { %1763 = vrcp.f32 %v465_v52  ;;  %v410_v55 = vadd.f32 %v1722_v51, %v409_v53 }
 0x4b6   :  { %493 = vmatpush.msrb.mxu0 %v410_v55 }
 0x4b8   :  { %494 = vmatpush.msrb.mxu0 %v407_v56 }
 0x4ba   :  { %v1764_v57 = vpop.eup %1763 }
 0x4bb   :  { %v468_v58 = vpop.xlane.xlu1 %467  ;;  %v471_v59 = vmul.f32 %v1764_v57, %v1760_v41 }
 0x4bc   :  { %1765 = vrcp.f32 %v468_v58 }
 0x4bd   :  { %1661 = vmatmul.msk.f32.vlgmr.msrb.gmra.mxu0 %vm232_vm12, %v471_v59 }
 0x4c2   :  { %v1766_v60 = vpop.eup %1765 }
 0x4c3   :  { %v472_v61 = vmul.f32 %v1766_v60, %v1762_v44  ;;  %v1724_v44 = vld [vmem:[%s2517_s1 + $0x1b8] ss:$0 sm:$0xff]  ;;  %v1726_v60 = vld [vmem:[%s2517_s1 + $0x1e8] ss:$0 sm:$0xff] }
 0x4c5   :  { %1662 = vmatmul.msk.f32.gmra.mxu0 %vm232_vm12, %v472_v61 }
 0x51f   :  { %v556_v2 = vpop.f32.mrf.mxu2 }
 0x527   :  { %v559_v9 = vpop.f32.mrf.mxu2 }
 0x53a   :  { %v496_v0 = vpop.f32.mrf.mxu0 }
 0x53b   :  { %1663 = vmatmul.msk.f32.vlgmr.msrb.gmra.mxu1 %vm232_vm12, %v496_v0 }
 0x542   :  { %v499_v1 = vpop.f32.mrf.mxu0 }
 0x543   :  { %1664 = vmatmul.msk.f32.gmra.mxu1 %vm232_vm12, %v499_v1 }
 0x5b8   :  { %v527_v4 = vpop.f32.mrf.mxu1 }
 0x5b9   :  { %v557_v5 = vadd.f32 %v556_v2, %v527_v4 }
 0x5bb   :  { %v564_v6 = vadd.f32 %v1723_v3, %v557_v5 }
 0x5bd   :  { %v566_v7 = vadd.f32 %v564_v6, %v1978_v22 }
 0x5bf   :  { %v570_v8 = vsel %vm79_vm4, %v566_v7, 0.0 }
 0x5c0   :  { %571 = vadd.xlane.f32.xlu2 %v570_v8  ;;  %v530_v10 = vpop.f32.mrf.mxu1 }
 0x5c1   :  { %v560_v11 = vadd.f32 %v559_v9, %v530_v10 }
 0x5c3   :  { %v565_v12 = vadd.f32 %v1723_v3, %v560_v11  ;;  %v750_v3 = vld [vmem:[%s2517_s1 + $0x228] sm:$0xff]  ;;  %v748_v11 = vld [vmem:[%s2517_s1 + $0x218] sm:$0xff] }
 0x5c4   :  { %768 = vmatpush.msra.mxu0 %v750_v3 }
 0x5c5   :  { %v567_v13 = vadd.f32 %v565_v12, %v1987_v27  ;;  %v623_v27 = vld [vmem:[%s2517_s1 + $0x1e0] sm:$0xff] }
 0x5c6   :  { %644 = vmatpush.msrb.mxu3 %v623_v27 }
 0x5c7   :  { %v573_v14 = vsel %vm79_vm4, %v567_v13, 0.0 }
 0x5c8   :  { %574 = vadd.xlane.f32.xlu1 %v573_v14  ;;  %645 = vmatpush.msrb.mxu3 %v622_v25 }
 0x5ca   :  { %646 = vmatpush.msrb.mxu3 %v621_v26 }
 0x5cc   :  { %647 = vmatpush.msrb.mxu3 %v620_v28  ;;  %v744_v28 = vld [vmem:[%s2517_s1 + $0x1f8] sm:$0xff] }
 0x633   :  { %v572_v15 = vpop.xlane.xlu2 %571 }
 0x634   :  { %v576_v16 = vmul.f32 %v572_v15, %v1907_v37  ;;  %v747_v15 = vld [vmem:[%s2517_s1 + $0x210] sm:$0xff] }
 0x636   :  { %v578_v17 = vsub.f32 %v566_v7, %v576_v16  ;;  %v749_v7 = vld [vmem:[%s2517_s1 + $0x220] sm:$0xff] }
 0x637   :  { %769 = vmatpush.msra.mxu0 %v749_v7 }
 0x638   :  { %v580_v18 = vmul.f32 %v578_v17, %v578_v17 }
 0x639   :  { %770 = vmatpush.msra.mxu0 %v748_v11 }
 0x63a   :  { %v582_v19 = vsel %vm79_vm4, %v580_v18, 0.0 }
 0x63b   :  { %583 = vadd.xlane.f32.xlu2 %v582_v19  ;;  %v575_v22 = vpop.xlane.xlu1 %574  ;;  %771 = vmatpush.msra.mxu0 %v747_v15  ;;  %v746_v19 = vld [vmem:[%s2517_s1 + $0x208] sm:$0xff] }
 0x63c   :  { %v577_v20 = vmul.f32 %v575_v22, %v1907_v37 }
 0x63d   :  { %772 = vmatpush.msra.mxu0 %v746_v19 }
 0x63e   :  { %v579_v21 = vsub.f32 %v567_v13, %v577_v20 }
 0x640   :  { %v581_v23 = vmul.f32 %v579_v21, %v579_v21 }
 0x642   :  { %v585_v24 = vsel %vm79_vm4, %v581_v23, 0.0  ;;  %v745_v23 = vld [vmem:[%s2517_s1 + $0x200] sm:$0xff] }
 0x643   :  { %586 = vadd.xlane.f32.xlu1 %v585_v24  ;;  %773 = vmatpush.msra.mxu0 %v745_v23 }
 0x645   :  { %774 = vmatpush.msra.mxu0 %v744_v28 }
 0x6ae   :  { %v584_v29 = vpop.xlane.xlu2 %583 }
 0x6af   :  { %v588_v30 = vmul.f32 %v584_v29, %v1907_v37 }
 0x6b1   :  { %v590_v31 = vadd.f32 1e-12, %v588_v30 }
 0x6b3   :  { %1767 = vrsqrt.f32 %v590_v31  ;;  %vm598_vm14 = vweird.f32 %v590_v31 }
 0x6b6   :  { %v587_v32 = vpop.xlane.xlu1 %586 }
 0x6b7   :  { %v589_v33 = vmul.f32 %v587_v32, %v1907_v37  ;;  %v743_v32 = vld [vmem:[%s2517_s1 + $0x1f0] sm:$0xff] }
 0x6b8   :  { %775 = vmatpush.msra.mxu0 %v743_v32 }
 0x6b9   :  { %v1768_v34 = vpop.eup %1767  ;;  %v591_v35 = vadd.f32 1e-12, %v589_v33 }
 0x6ba   :  { %v593_v36 = vmul.f32 %v1768_v34, %v590_v31  ;;  %vm599_vm13 = vweird.f32 %v1768_v34 }
 0x6bb   :  { %1769 = vrsqrt.f32 %v591_v35  ;;  %vm600_vm15 = vmor %vm598_vm14, %vm599_vm13  ;;  %vm608_vm1 = vweird.f32 %v591_v35 }
 0x6bc   :  { %v594_v38 = vmul.f32 %v1768_v34, %v593_v36 }
 0x6be   :  { %v595_v39 = vmul.f32 0.5, %v594_v38 }
 0x6c0   :  { %v596_v40 = vsub.f32 1.5, %v595_v39 }
 0x6c1   :  { %v1770_v41 = vpop.eup %1769 }
 0x6c2   :  { %v597_v42 = vmul.f32 %v1768_v34, %v596_v40  ;;  %v603_v43 = vmul.f32 %v1770_v41, %v591_v35  ;;  %vm609_vm0 = vweird.f32 %v1770_v41 }
 0x6c3   :  { %vm610_vm2 = vmor %vm608_vm1, %vm609_vm0 }
 0x6c4   :  { %v601_v45 = vsel %vm600_vm15, %v1768_v34, %v597_v42  ;;  %v604_v46 = vmul.f32 %v1770_v41, %v603_v43 }
 0x6c5   :  { %v612_v47 = vmul.f32 %v601_v45, %v578_v17 }
 0x6c6   :  { %v605_v50 = vmul.f32 0.5, %v604_v46 }
 0x6c7   :  { %v615_v51 = vmul.f32 %v1724_v44, %v612_v47 }
 0x6c8   :  { %v606_v52 = vsub.f32 1.5, %v605_v50 }
 0x6c9   :  { %v2130_v53 = vadd.f32 %v1725_v48, %v615_v51 }
 0x6ca   :  { %v607_v55 = vmul.f32 %v1770_v41, %v606_v52 }
 0x6cb   :  { %1667 = vmatmul.msk.f32.vlgmr.msrb.gmra.mxu3 %vm79_vm4, %v2130_v53 }
 0x6cc   :  { %v611_v56 = vsel %vm610_vm2, %v1770_v41, %v607_v55 }
 0x6cd   :  { %v613_v57 = vmul.f32 %v611_v56, %v579_v21 }
 0x6cf   :  { %v616_v58 = vmul.f32 %v1724_v44, %v613_v57 }
 0x6d1   :  { %v2134_v59 = vadd.f32 %v1725_v48, %v616_v58 }
 0x6d3   :  { %1668 = vmatmul.msk.f32.gmra.mxu3 %vm79_vm4, %v2134_v59 }
 0x74e   :  { %v649_v61 = vpop.f32.mrf.mxu3 }
 0x74f   :  { %v2141_v62 = vadd.f32 %v1726_v60, %v649_v61 }
 0x751   :  { %v2144_v63 = vmul.f32 0.70710677, %v2141_v62 }
 0x753   :  { %v659_v0 = vmul.f32 %v2144_v63, %v2144_v63 }
 0x755   :  { %v660_v1 = vmin.f32 %v659_v0, 16.0 }
 0x756   :  { %v652_v2 = vpop.f32.mrf.mxu3 }
 0x757   :  { %v661_v4 = vmul.f32 2.1237322e-06, %v660_v1  ;;  %v672_v5 = vmul.f32 3.8918573e-05, %v660_v1  ;;  %v2151_v6 = vadd.f32 %v1726_v60, %v652_v2 }
 0x759   :  { %v662_v8 = vadd.f32 0.00028619796, %v661_v4  ;;  %v673_v9 = vadd.f32 0.001143296, %v672_v5  ;;  %v2157_v10 = vmul.f32 0.70710677, %v2151_v6 }
 0x75a   :  { %v656_v28 = vmul.f32 0.5, %v2151_v6 }
 0x75b   :  { %v663_v12 = vmul.f32 %v662_v8, %v660_v1  ;;  %v674_v13 = vmul.f32 %v673_v9, %v660_v1  ;;  %v699_v14 = vmul.f32 %v2157_v10, %v2157_v10 }
 0x75d   :  { %v675_v16 = vadd.f32 0.014752088, %v674_v13  ;;  %v664_v17 = vadd.f32 0.0036580483, %v663_v12  ;;  %v700_v18 = vmin.f32 %v699_v14, 16.0 }
 0x75f   :  { %v676_v22 = vmul.f32 %v675_v16, %v660_v1  ;;  %v701_v20 = vmul.f32 2.1237322e-06, %v700_v18  ;;  %v712_v21 = vmul.f32 3.8918573e-05, %v700_v18  ;;  %v665_v27 = vmul.f32 %v664_v17, %v660_v1 }
 0x761   :  { %v677_v24 = vadd.f32 0.112945676, %v676_v22  ;;  %v702_v25 = vadd.f32 0.00028619796, %v701_v20  ;;  %v713_v26 = vadd.f32 0.001143296, %v712_v21 }
 0x762   :  { %v666_v34 = vadd.f32 0.05243302, %v665_v27  ;;  %v655_v22 = vmul.f32 0.5, %v2141_v62 }
 0x763   :  { %v678_v29 = vmul.f32 %v677_v24, %v660_v1  ;;  %v703_v30 = vmul.f32 %v702_v25, %v700_v18  ;;  %v714_v31 = vmul.f32 %v713_v26, %v700_v18 }
 0x764   :  { %v667_v41 = vmul.f32 %v666_v34, %v660_v1 }
 0x765   :  { %v679_v33 = vadd.f32 0.4994258, %v678_v29  ;;  %v715_v35 = vadd.f32 0.014752088, %v714_v31  ;;  %v704_v38 = vadd.f32 0.0036580483, %v703_v30 }
 0x766   :  { %v668_v45 = vadd.f32 0.18741608, %v667_v41  ;;  %v1727_v30 = vld [vmem:[%s2517_s1 + $0x230] ss:$0 sm:$0xff] }
 0x767   :  { %v680_v36 = vmul.f32 %v679_v33, %v660_v1  ;;  %v716_v39 = vmul.f32 %v715_v35, %v700_v18  ;;  %v705_v43 = vmul.f32 %v704_v38, %v700_v18 }
 0x768   :  { %v669_v51 = vmul.f32 %v668_v45, %v660_v1 }
 0x769   :  { %v681_v40 = vadd.f32 1.0, %v680_v36  ;;  %v717_v42 = vadd.f32 0.112945676, %v716_v39  ;;  %v706_v47 = vadd.f32 0.05243302, %v705_v43 }
 0x76a   :  { %v670_v60 = vadd.f32 1.1283791, %v669_v51  ;;  %v874_v51 = vld [vmem:[%s2517_s1 + $0x278] sm:$0xff] }
 0x76b   :  { %1771 = vrcp.f32 %v681_v40  ;;  %v718_v44 = vmul.f32 %v717_v42, %v700_v18  ;;  %v707_v56 = vmul.f32 %v706_v47, %v700_v18  ;;  %v693_v58 = vand.u32 2147483648, %v681_v40  ;;  %v875_v47 = vld [vmem:[%s2517_s1 + $0x280] sm:$0xff] }
 0x76c   :  { %v691_v0 = vand.u32 2147483647, %v681_v40  ;;  %vm687_vm5 = vweird.f32 %v681_v40  ;;  %v671_v7 = vmul.f32 %v670_v60, %v2144_v63  ;;  %890 = vmatpush.msra.mxu2 %v875_v47  ;;  %v872_v60 = vld [vmem:[%s2517_s1 + $0x268] sm:$0xff]  ;;  %v1082_v47 = vld [vmem:[%s2517_s1 + $0x320] sm:$0xff] }
 0x76d   :  { %v719_v46 = vadd.f32 0.4994258, %v718_v44  ;;  %v708_v2 = vadd.f32 0.18741608, %v707_v56  ;;  %v694_v4 = vor.u32 1.1754944e-38, %v693_v58  ;;  %v873_v56 = vld [vmem:[%s2517_s1 + $0x270] sm:$0xff] }
 0x76e   :  { %vm692_vm7 = vcmp.eq.f32.partialorder %v691_v0, 8.507059e+37  ;;  %891 = vmatpush.msra.mxu2 %v874_v51  ;;  %v837_v58 = vld [vmem:[%s2517_s1 + $0x248] sm:$0xff]  ;;  %v1080_v51 = vld [vmem:[%s2517_s1 + $0x310] sm:$0xff] }
 0x76f   :  { %v720_v48 = vmul.f32 %v719_v46, %v700_v18  ;;  %v709_v9 = vmul.f32 %v708_v2, %v700_v18  ;;  %v840_v46 = vld [vmem:[%s2517_s1 + $0x260] sm:$0xff] }
 0x770   :  { %861 = vmatpush.msra.mxu1 %v840_v46  ;;  %892 = vmatpush.msra.mxu2 %v873_v56  ;;  %v1734_v56 = vld [vmem:[%s2517_s1 + $0x338] ss:$0 sm:$0xff] }
 0x771   :  { %v1772_v50 = vpop.eup %1771  ;;  %v721_v55 = vadd.f32 1.0, %v720_v48  ;;  %v710_v16 = vadd.f32 1.1283791, %v709_v9  ;;  %v904_v48 = vld [vmem:[%s2517_s1 + $0x2a0] sm:$0xff]  ;;  %v1023_v9 = vld [vmem:[%s2517_s1 + $0x2d8] sm:$0xff] }
 0x772   :  { %v683_v52 = vmul.f32 %v1772_v50, %v681_v40  ;;  %vm688_vm3 = vweird.f32 %v1772_v50  ;;  %919 = vmatpush.msra.mxu3 %v904_v48  ;;  %893 = vmatpush.msra.mxu2 %v872_v60 }
 0x773   :  { %1773 = vrcp.f32 %v721_v55  ;;  %vm689_vm6 = vmor %vm687_vm5, %vm688_vm3  ;;  %v733_v15 = vand.u32 2147483648, %v721_v55  ;;  %v731_v19 = vand.u32 2147483647, %v721_v55  ;;  %vm727_vm9 = vweird.f32 %v721_v55 }
 0x774   :  { %v684_v57 = vsub.f32 1.0, %v683_v52  ;;  %v711_v18 = vmul.f32 %v710_v16, %v2157_v10  ;;  %v903_v52 = vld [vmem:[%s2517_s1 + $0x298] sm:$0xff] }
 0x775   :  { %v734_v23 = vor.u32 1.1754944e-38, %v733_v15  ;;  %vm732_vm13 = vcmp.eq.f32.partialorder %v731_v19, 8.507059e+37  ;;  %920 = vmatpush.msra.mxu3 %v903_v52  ;;  %v1051_v15 = vld [vmem:[%s2517_s1 + $0x2f0] sm:$0xff] }
 0x776   :  { %v685_v61 = vmul.f32 %v1772_v50, %v684_v57  ;;  %v902_v57 = vld [vmem:[%s2517_s1 + $0x290] sm:$0xff] }
 0x777   :  { %921 = vmatpush.msra.mxu3 %v902_v57 }
 0x778   :  { %v686_v3 = vadd.f32 %v1772_v50, %v685_v61  ;;  %v901_v61 = vld [vmem:[%s2517_s1 + $0x288] sm:$0xff] }
 0x779   :  { %v1774_v5 = vpop.eup %1773  ;;  %922 = vmatpush.msra.mxu3 %v901_v61 }
 0x77a   :  { %v690_v8 = vsel %vm689_vm6, %v1772_v50, %v686_v3  ;;  %v723_v11 = vmul.f32 %v1774_v5, %v721_v55  ;;  %vm728_vm8 = vweird.f32 %v1774_v5  ;;  %v839_v50 = vld [vmem:[%s2517_s1 + $0x258] sm:$0xff]  ;;  %v838_v55 = vld [vmem:[%s2517_s1 + $0x250] sm:$0xff] }
 0x77b   :  { %v695_v1 = vsel %vm692_vm7, %v694_v4, %v690_v8  ;;  %vm729_vm11 = vmor %vm727_vm9, %vm728_vm8  ;;  %862 = vmatpush.msra.mxu1 %v839_v50  ;;  %v1025_v4 = vld [vmem:[%s2517_s1 + $0x2e8] sm:$0xff]  ;;  %v1053_v8 = vld [vmem:[%s2517_s1 + $0x300] sm:$0xff] }
 0x77c   :  { %v696_v12 = vmul.f32 %v695_v1, %v671_v7  ;;  %v724_v13 = vsub.f32 1.0, %v723_v11  ;;  %v1024_v7 = vld [vmem:[%s2517_s1 + $0x2e0] sm:$0xff]  ;;  %1040 = vmatpush.msrb.mxu2 %v1025_v4  ;;  %v1052_v11 = vld [vmem:[%s2517_s1 + $0x2f8] sm:$0xff] }
 0x77d   :  { %863 = vmatpush.msra.mxu1 %v838_v55  ;;  %v1081_v50 = vld [vmem:[%s2517_s1 + $0x318] sm:$0xff] }
 0x77e   :  { %v1669_v14 = vclamps-f32 %v696_v12, 1.0  ;;  %v725_v17 = vmul.f32 %v1774_v5, %v724_v13  ;;  %1041 = vmatpush.msrb.mxu2 %v1024_v7 }
 0x77f   :  { %864 = vmatpush.msra.mxu1 %v837_v58 }
 0x780   :  { %v739_v20 = vadd.f32 1.0, %v1669_v14  ;;  %v726_v21 = vadd.f32 %v1774_v5, %v725_v17  ;;  %v1022_v14 = vld [vmem:[%s2517_s1 + $0x2d0] sm:$0xff]  ;;  %1042 = vmatpush.msrb.mxu2 %v1023_v9  ;;  %v1735_v9 = vld [vmem:[%s2517_s1 + $0x340] ss:$0 sm:$0xff] }
 0x782   :  { %v741_v63 = vmul.f32 %v739_v20, %v655_v22  ;;  %v730_v24 = vsel %vm729_vm11, %v1774_v5, %v726_v21  ;;  %v1054_v5 = vld [vmem:[%s2517_s1 + $0x308] sm:$0xff]  ;;  %1043 = vmatpush.msrb.mxu2 %v1022_v14 }
 0x783   :  { %v735_v27 = vsel %vm732_vm13, %v734_v23, %v730_v24  ;;  %1069 = vmatpush.msrb.mxu3 %v1054_v5  ;;  %v1728_v23 = vld [vmem:[%s2517_s1 + $0x238] ss:$0 sm:$0xff] }
 0x784   :  { %1671 = vmatmul.msk.f32.vlgmr.msra.gmra.mxu0 %vm753_vm10, %v741_v63  ;;  %v736_v25 = vmul.f32 %v735_v27, %v711_v18  ;;  %v1729_v27 = vld [vmem:[%s2517_s1 + $0x240] ss:$0 sm:$0xff] }
 0x785   :  { %1070 = vmatpush.msrb.mxu3 %v1053_v8 }
 0x786   :  { %v1670_v26 = vclamps-f32 %v736_v25, 1.0 }
 0x787   :  { %1071 = vmatpush.msrb.mxu3 %v1052_v11 }
 0x788   :  { %v740_v29 = vadd.f32 1.0, %v1670_v26 }
 0x789   :  { %1072 = vmatpush.msrb.mxu3 %v1051_v15 }
 0x78a   :  { %v742_v62 = vmul.f32 %v740_v29, %v656_v28 }
 0x78c   :  { %1672 = vmatmul.msk.f32.gmra.mxu0 %vm753_vm10, %v742_v62 }
 0x801   :  { %v777_v31 = vpop.f32.mrf.mxu0 }
 0x802   :  { %v778_v32 = vadd.f32 %v1727_v30, %v777_v31 }
 0x804   :  { %v783_v10 = vadd.f32 %v778_v32, %v2130_v53 }
 0x806   :  { %v787_v33 = vsel %vm79_vm4, %v783_v10, 0.0 }
 0x807   :  { %788 = vadd.xlane.f32.xlu2 %v787_v33 }
 0x809   :  { %v780_v34 = vpop.f32.mrf.mxu0 }
 0x80a   :  { %v781_v35 = vadd.f32 %v1727_v30, %v780_v34 }
 0x80c   :  { %v784_v36 = vadd.f32 %v781_v35, %v2134_v59 }
 0x80e   :  { %v790_v6 = vsel %vm79_vm4, %v784_v36, 0.0 }
 0x80f   :  { %791 = vadd.xlane.f32.xlu0 %v790_v6  ;;  %v1731_v6 = vld [vmem:[%s2517_s1 + $0x2b0] ss:$0 sm:$0xff] }
 0x87a   :  { %v789_v38 = vpop.xlane.xlu2 %788 }
 0x87b   :  { %v793_v39 = vmul.f32 %v789_v38, %v1907_v37  ;;  %v1732_v38 = vld [vmem:[%s2517_s1 + $0x2b8] ss:$0 sm:$0xff] }
 0x87d   :  { %v2193_v40 = vsub.f32 %v783_v10, %v793_v39 }
 0x87f   :  { %v797_v41 = vmul.f32 %v2193_v40, %v2193_v40 }
 0x881   :  { %v799_v53 = vsel %vm79_vm4, %v797_v41, 0.0 }
 0x882   :  { %800 = vadd.xlane.f32.xlu1 %v799_v53  ;;  %v792_v42 = vpop.xlane.xlu0 %791 }
 0x883   :  { %v794_v43 = vmul.f32 %v792_v42, %v1907_v37 }
 0x885   :  { %v2199_v44 = vsub.f32 %v784_v36, %v794_v43  ;;  %v1730_v43 = vld [vmem:[%s2517_s1 + $0x2a8] ss:$0 sm:$0xff] }
 0x887   :  { %v798_v59 = vmul.f32 %v2199_v44, %v2199_v44 }
 0x889   :  { %v802_v45 = vsel %vm79_vm4, %v798_v59, 0.0 }
 0x88a   :  { %803 = vadd.xlane.f32.xlu2 %v802_v45  ;;  %v1083_v45 = vld [vmem:[%s2517_s1 + $0x328] sm:$0xff] }
 0x8f5   :  { %v801_v0 = vpop.xlane.xlu1 %800 }
 0x8f6   :  { %v805_v2 = vmul.f32 %v801_v0, %v1907_v37 }
 0x8f8   :  { %v807_v3 = vadd.f32 1e-12, %v805_v2 }
 0x8fa   :  { %1775 = vrsqrt.f32 %v807_v3  ;;  %vm815_vm15 = vweird.f32 %v807_v3 }
 0x8fd   :  { %v804_v1 = vpop.xlane.xlu2 %803 }
 0x8fe   :  { %v806_v12 = vmul.f32 %v804_v1, %v1907_v37 }
 0x900   :  { %v1776_v13 = vpop.eup %1775  ;;  %v808_v17 = vadd.f32 1e-12, %v806_v12 }
 0x901   :  { %v810_v16 = vmul.f32 %v1776_v13, %v807_v3  ;;  %vm816_vm14 = vweird.f32 %v1776_v13 }
 0x902   :  { %1777 = vrsqrt.f32 %v808_v17  ;;  %vm817_vm0 = vmor %vm815_vm15, %vm816_vm14  ;;  %vm825_vm2 = vweird.f32 %v808_v17 }
 0x903   :  { %v811_v19 = vmul.f32 %v1776_v13, %v810_v16 }
 0x905   :  { %v812_v22 = vmul.f32 0.5, %v811_v19 }
 0x907   :  { %v813_v20 = vsub.f32 1.5, %v812_v22 }
 0x908   :  { %v1778_v21 = vpop.eup %1777 }
 0x909   :  { %v814_v63 = vmul.f32 %v1776_v13, %v813_v20  ;;  %v820_v18 = vmul.f32 %v1778_v21, %v808_v17  ;;  %vm826_vm1 = vweird.f32 %v1778_v21 }
 0x90a   :  { %vm827_vm3 = vmor %vm825_vm2, %vm826_vm1 }
 0x90b   :  { %v818_v24 = vsel %vm817_vm0, %v1776_v13, %v814_v63  ;;  %v821_v26 = vmul.f32 %v1778_v21, %v820_v18 }
 0x90c   :  { %v829_v25 = vmul.f32 %v818_v24, %v2193_v40  ;;  %v1021_v24 = vld [vmem:[%s2517_s1 + $0x2c8] sm:$0xff] }
 0x90d   :  { %v822_v29 = vmul.f32 0.5, %v821_v26 }
 0x90e   :  { %v832_v28 = vmul.f32 %v1728_v23, %v829_v25 }
 0x90f   :  { %v823_v30 = vsub.f32 1.5, %v822_v29 }
 0x910   :  { %v2273_v62 = vadd.f32 %v1729_v27, %v832_v28 }
 0x911   :  { %v824_v31 = vmul.f32 %v1778_v21, %v823_v30 }
 0x912   :  { %1673 = vmatmul.msk.f32.vlgmr.msra.gmra.mxu1 %vm79_vm4, %v2273_v62  ;;  %1675 = vmatmul.msk.f32.vlgmr.msra.gmra.mxu2 %vm79_vm4, %v2273_v62 }
 0x913   :  { %1677 = vmatmul.msk.f32.vlgmr.msra.gmra.mxu3 %vm79_vm4, %v2273_v62  ;;  %v828_v32 = vsel %vm827_vm3, %v1778_v21, %v824_v31  ;;  %v1733_v31 = vld [vmem:[%s2517_s1 + $0x330] ss:$0 sm:$0xff] }
 0x914   :  { %v830_v10 = vmul.f32 %v828_v32, %v2199_v44 }
 0x916   :  { %v833_v33 = vmul.f32 %v1728_v23, %v830_v10 }
 0x918   :  { %v2282_v34 = vadd.f32 %v1729_v27, %v833_v33 }
 0x91a   :  { %1674 = vmatmul.msk.f32.gmra.mxu1 %vm79_vm4, %v2282_v34  ;;  %1676 = vmatmul.msk.f32.gmra.mxu2 %vm79_vm4, %v2282_v34 }
 0x91b   :  { %1678 = vmatmul.msk.f32.gmra.mxu3 %vm79_vm4, %v2282_v34 }
 0x922   :  { %1685 = vmatmul.msk.f32.vlgmr.msrb.gmra.mxu2 %vm79_vm4, %v2273_v62 }
 0x923   :  { %1687 = vmatmul.msk.f32.vlgmr.msrb.gmra.mxu3 %vm79_vm4, %v2273_v62 }
 0x92a   :  { %1686 = vmatmul.msk.f32.gmra.mxu2 %vm79_vm4, %v2282_v34 }
 0x92b   :  { %1688 = vmatmul.msk.f32.gmra.mxu3 %vm79_vm4, %v2282_v34 }
 0x98f   :  { %v866_v42 = vpop.f32.mrf.mxu1 }
 0x990   :  { %v867_v46 = vadd.f32 %v1730_v43, %v866_v42 }
 0x995   :  { %v895_v35 = vpop.f32.mrf.mxu2 }
 0x996   :  { %v924_v36 = vpop.f32.mrf.mxu3  ;;  %v896_v59 = vadd.f32 %v1731_v6, %v895_v35  ;;  %v1020_v35 = vld [vmem:[%s2517_s1 + $0x2c0] sm:$0xff] }
 0x997   :  { %v925_v44 = vadd.f32 %v1732_v38, %v924_v36  ;;  %v869_v52 = vpop.f32.mrf.mxu1 }
 0x998   :  { %v870_v55 = vadd.f32 %v1730_v43, %v869_v52 }
 0x99d   :  { %v898_v39 = vpop.f32.mrf.mxu2 }
 0x99e   :  { %v899_v40 = vadd.f32 %v1731_v6, %v898_v39  ;;  %v927_v41 = vpop.f32.mrf.mxu3 }
 0x99f   :  { %v928_v53 = vadd.f32 %v1732_v38, %v927_v41 }
 0x9a0   :  { %1679 = vmatpush.xpose.msk.msrb.mxu0 %vm232_vm12, %v899_v40 }
 0x9a1   :  { %1011 = vmatpush.msrb.mxu1 %v928_v53 }
 0x9a3   :  { %1012 = vmatpush.msrb.mxu1 %v925_v44 }
 0x9a4   :  { %1680 = vmatpush.xpose.msk.msrb.mxu0 %vm232_vm12, %v896_v59 }
 0x9a5   :  { %v1045_v30 = vpop.f32.mrf.mxu2 }
 0x9a6   :  { %v1074_v48 = vpop.f32.mrf.mxu3  ;;  %v1046_v32 = vadd.f32 %v1733_v31, %v1045_v30 }
 0x9a7   :  { %1681 = vmatmul.msk.f32.vlgmr.msrb.gmra.mxu0 %vm232_vm12, %v867_v46  ;;  %v1075_v60 = vadd.f32 %v1734_v56, %v1074_v48 }
 0x9a8   :  { %1098 = vmatpush.msra.mxu0 %v1083_v45 }
 0x9aa   :  { %1099 = vmatpush.msra.mxu0 %v1082_v47 }
 0x9ac   :  { %1100 = vmatpush.msra.mxu0 %v1081_v50 }
 0x9ad   :  { %v1048_v10 = vpop.f32.mrf.mxu2 }
 0x9ae   :  { %1101 = vmatpush.msra.mxu0 %v1080_v51  ;;  %v1077_v57 = vpop.f32.mrf.mxu3  ;;  %v1049_v33 = vadd.f32 %v1733_v31, %v1048_v10 }
 0x9af   :  { %v1078_v58 = vadd.f32 %v1734_v56, %v1077_v57  ;;  %1682 = vmatmul.msk.f32.gmra.mxu0 %vm232_vm12, %v870_v55 }
 0x9b0   :  { %1250 = vmatpush.msrb.mxu0 %v1021_v24 }
 0x9b1   :  { %1691 = vmatpush.xpose.msk.msra.mxu1 %vm232_vm12, %v1078_v58 }
 0x9b2   :  { %1251 = vmatpush.msrb.mxu0 %v1020_v35 }
 0x9b5   :  { %1692 = vmatpush.xpose.msk.msra.mxu1 %vm232_vm12, %v1075_v60 }
 0x9b7   :  { %1689 = vmatmul.msk.f32.vlgmr.msra.gmra.mxu0 %vm79_vm4, %v2273_v62 }
 0x9bf   :  { %1690 = vmatmul.msk.f32.gmra.mxu0 %vm79_vm4, %v2282_v34 }
 0xa24   :  { %v959_v61 = vpop.f32.mrf.mxu0 }
 0xa25   :  { %v965_v0 = vmul.f32 0.25, %v959_v61 }
 0xa27   :  { %v967_v2 = vadd.f32 %v965_v0, %v2031_v49 }
 0xa29   :  { %v969_v3 = vsel %vm232_vm12, %v967_v2, -inf }
 0xa2a   :  { %970 = vmax.xlane.f32.xlu0 %v969_v3 }
 0xa2c   :  { %v962_v4 = vpop.f32.mrf.mxu0 }
 0xa2d   :  { %v966_v5 = vmul.f32 0.25, %v962_v4 }
 0xa2f   :  { %v968_v7 = vadd.f32 %v966_v5, %v2038_v54 }
 0xa31   :  { %v972_v8 = vsel %vm232_vm12, %v968_v7, -inf }
 0xa32   :  { %973 = vmax.xlane.f32.xlu1 %v972_v8 }
 0xa34   :  { %v1103_v1 = vpop.f32.mrf.mxu0 }
 0xa35   :  { %v1104_v13 = vadd.f32 %v1735_v9, %v1103_v1 }
 0xa3c   :  { %v1106_v11 = vpop.f32.mrf.mxu0 }
 0xa3d   :  { %v1107_v12 = vadd.f32 %v1735_v9, %v1106_v11 }
 0xa3f   :  { %1190 = vmatpush.msra.mxu2 %v1107_v12 }
 0xa41   :  { %1191 = vmatpush.msra.mxu2 %v1104_v13 }
 0xa9d   :  { %v971_v14 = vpop.xlane.xlu0 %970 }
 0xa9e   :  { %v975_v15 = vsub.f32 %v967_v2, %v971_v14  ;;  %v1199_v2 = vld [vmem:[%s2517_s1 + $0x348] sm:$0xff] }
 0xaa0   :  { %v977_v16 = vmul.f32 1.442695, %v975_v15 }
 0xaa2   :  { %1779 = vpow2.f32 %v977_v16 }
 0xaa5   :  { %v974_v17 = vpop.xlane.xlu1 %973 }
 0xaa6   :  { %v976_v19 = vsub.f32 %v968_v7, %v974_v17  ;;  %v1736_v7 = vld [vmem:[%s2517_s1 + $0x358] ss:$0 sm:$0xff] }
 0xaa8   :  { %v1780_v22 = vpop.eup %1779  ;;  %v979_v20 = vmul.f32 1.442695, %v976_v19 }
 0xaa9   :  { %v981_v21 = vsel %vm232_vm12, %v1780_v22, 0.0 }
 0xaaa   :  { %1781 = vpow2.f32 %v979_v20  ;;  %982 = vadd.xlane.f32.xlu2 %v981_v21 }
 0xab0   :  { %v1782_v63 = vpop.eup %1781 }
 0xab1   :  { %v984_v23 = vsel %vm232_vm12, %v1782_v63, 0.0 }
 0xab2   :  { %985 = vadd.xlane.f32.xlu0 %v984_v23 }
 0xb1d   :  { %v983_v18 = vpop.xlane.xlu2 %982 }
 0xb1e   :  { %1783 = vrcp.f32 %v983_v18 }
 0xb24   :  { %v1784_v27 = vpop.eup %1783 }
 0xb25   :  { %v989_v25 = vmul.f32 %v1784_v27, %v1780_v22  ;;  %v986_v26 = vpop.xlane.xlu0 %985 }
 0xb26   :  { %1785 = vrcp.f32 %v986_v26  ;;  %v1319_v26 = vld [vmem:[%s2517_s1 + $0x380] sm:$0xff] }
 0xb27   :  { %1683 = vmatmul.msk.f32.vlgmr.msrb.gmra.mxu1 %vm232_vm12, %v989_v25 }
 0xb2c   :  { %v1786_v28 = vpop.eup %1785 }
 0xb2d   :  { %v990_v29 = vmul.f32 %v1786_v28, %v1782_v63  ;;  %v1318_v28 = vld [vmem:[%s2517_s1 + $0x378] sm:$0xff] }
 0xb2f   :  { %1684 = vmatmul.msk.f32.gmra.mxu1 %vm232_vm12, %v990_v29  ;;  %v1317_v29 = vld [vmem:[%s2517_s1 + $0x370] sm:$0xff] }
 0xb37   :  { %1693 = vmatmul.msk.f32.vlgmr.msra.gmra.mxu1 %vm232_vm12, %v1046_v32 }
 0xb3f   :  { %1694 = vmatmul.msk.f32.gmra.mxu1 %vm232_vm12, %v1049_v33 }
 0xba4   :  { %v1014_v36 = vpop.f32.mrf.mxu1 }
 0xba5   :  { %1699 = vmatmul.msk.f32.vlgmr.msrb.gmra.mxu0 %vm232_vm12, %v1014_v36 }
 0xbac   :  { %v1017_v6 = vpop.f32.mrf.mxu1 }
 0xbad   :  { %1700 = vmatmul.msk.f32.gmra.mxu0 %vm232_vm12, %v1017_v6 }
 0xbb4   :  { %v1138_v38 = vpop.f32.mrf.mxu1 }
 0xbb5   :  { %v1144_v39 = vmul.f32 0.25, %v1138_v38 }
 0xbb7   :  { %v1146_v40 = vadd.f32 %v1144_v39, %v2031_v49 }
 0xbb9   :  { %v1148_v41 = vsel %vm232_vm12, %v1146_v40, -inf }
 0xbba   :  { %1149 = vmax.xlane.f32.xlu1 %v1148_v41 }
 0xbbc   :  { %v1141_v53 = vpop.f32.mrf.mxu1 }
 0xbbd   :  { %v1145_v42 = vmul.f32 0.25, %v1141_v53 }
 0xbbf   :  { %v1147_v43 = vadd.f32 %v1145_v42, %v2038_v54  ;;  %v1200_v54 = vld [vmem:[%s2517_s1 + $0x350] sm:$0xff] }
 0xbc0   :  { %1221 = vmatpush.msra.mxu3 %v1200_v54 }
 0xbc1   :  { %v1151_v44 = vsel %vm232_vm12, %v1147_v43, -inf }
 0xbc2   :  { %1152 = vmax.xlane.f32.xlu2 %v1151_v44  ;;  %1222 = vmatpush.msra.mxu3 %v1199_v2 }
 0xc22   :  { %v1253_v5 = vpop.f32.mrf.mxu0 }
 0xc2a   :  { %v1256_v13 = vpop.f32.mrf.mxu0 }
 0xc2d   :  { %v1150_v59 = vpop.xlane.xlu1 %1149 }
 0xc2e   :  { %v1154_v45 = vsub.f32 %v1146_v40, %v1150_v59 }
 0xc30   :  { %v1156_v46 = vmul.f32 1.442695, %v1154_v45 }
 0xc32   :  { %1787 = vpow2.f32 %v1156_v46  ;;  %v1738_v46 = vld [vmem:[%s2517_s1 + $0x368] ss:$0 sm:$0xff] }
 0xc35   :  { %v1153_v47 = vpop.xlane.xlu2 %1152 }
 0xc36   :  { %v1155_v48 = vsub.f32 %v1147_v43, %v1153_v47  ;;  %v1737_v43 = vld [vmem:[%s2517_s1 + $0x360] ss:$0 sm:$0xff] }
 0xc38   :  { %v1788_v50 = vpop.eup %1787  ;;  %v1158_v51 = vmul.f32 1.442695, %v1155_v48 }
 0xc39   :  { %v1160_v49 = vsel %vm232_vm12, %v1788_v50, 0.0 }
 0xc3a   :  { %1789 = vpow2.f32 %v1158_v51  ;;  %1161 = vadd.xlane.f32.xlu0 %v1160_v49 }
 0xc40   :  { %v1790_v52 = vpop.eup %1789 }
 0xc41   :  { %v1163_v55 = vsel %vm232_vm12, %v1790_v52, 0.0 }
 0xc42   :  { %1164 = vadd.xlane.f32.xlu1 %v1163_v55 }
 0xcad   :  { %v1162_v56 = vpop.xlane.xlu0 %1161 }
 0xcae   :  { %1791 = vrcp.f32 %v1162_v56 }
 0xcb4   :  { %v1792_v57 = vpop.eup %1791 }
 0xcb5   :  { %v1168_v58 = vmul.f32 %v1792_v57, %v1788_v50  ;;  %v1165_v60 = vpop.xlane.xlu1 %1164  ;;  %v1739_v57 = vld [vmem:[%s2517_s1 + $0x390] ss:$0 sm:$0xff] }
 0xcb6   :  { %1793 = vrcp.f32 %v1165_v60 }
 0xcb7   :  { %1695 = vmatmul.msk.f32.vlgmr.msra.gmra.mxu2 %vm232_vm12, %v1168_v58 }
 0xcbc   :  { %v1794_v61 = vpop.eup %1793 }
 0xcbd   :  { %v1169_v0 = vmul.f32 %v1794_v61, %v1790_v52 }
 0xcbf   :  { %1696 = vmatmul.msk.f32.gmra.mxu2 %vm232_vm12, %v1169_v0 }
 0xd3a   :  { %v1193_v3 = vpop.f32.mrf.mxu2 }
 0xd3b   :  { %1697 = vmatmul.msk.f32.vlgmr.msra.gmra.mxu3 %vm232_vm12, %v1193_v3 }
 0xd42   :  { %v1196_v4 = vpop.f32.mrf.mxu2 }
 0xd43   :  { %1698 = vmatmul.msk.f32.gmra.mxu3 %vm232_vm12, %v1196_v4  ;;  %v1447_v4 = vld [vmem:[%s2517_s1 + $0x3d0] sm:$0xff] }
 0xd44   :  { %1464 = vmatpush.msrb.mxu2 %v1447_v4 }
 0xdbe   :  { %v1224_v8 = vpop.f32.mrf.mxu3 }
 0xdbf   :  { %v1254_v1 = vadd.f32 %v1253_v5, %v1224_v8 }
 0xdc1   :  { %v1261_v9 = vadd.f32 %v1736_v7, %v1254_v1  ;;  %v1446_v1 = vld [vmem:[%s2517_s1 + $0x3c8] sm:$0xff] }
 0xdc2   :  { %1465 = vmatpush.msrb.mxu2 %v1446_v1 }
 0xdc3   :  { %v1263_v11 = vadd.f32 %v1261_v9, %v2273_v62 }
 0xdc5   :  { %v1267_v12 = vsel %vm79_vm4, %v1263_v11, 0.0 }
 0xdc6   :  { %1268 = vadd.xlane.f32.xlu2 %v1267_v12  ;;  %v1227_v14 = vpop.f32.mrf.mxu3 }
 0xdc7   :  { %v1257_v15 = vadd.f32 %v1256_v13, %v1227_v14  ;;  %v1445_v13 = vld [vmem:[%s2517_s1 + $0x3c0] sm:$0xff] }
 0xdc8   :  { %1466 = vmatpush.msrb.mxu2 %v1445_v13 }
 0xdc9   :  { %v1262_v16 = vadd.f32 %v1736_v7, %v1257_v15 }
 0xdcb   :  { %v1264_v17 = vadd.f32 %v1262_v16, %v2282_v34  ;;  %v1320_v34 = vld [vmem:[%s2517_s1 + $0x388] sm:$0xff] }
 0xdcc   :  { %1341 = vmatpush.msrb.mxu1 %v1320_v34 }
 0xdcd   :  { %v1270_v19 = vsel %vm79_vm4, %v1264_v17, 0.0 }
 0xdce   :  { %1271 = vadd.xlane.f32.xlu0 %v1270_v19  ;;  %1342 = vmatpush.msrb.mxu1 %v1319_v26  ;;  %v1441_v26 = vld [vmem:[%s2517_s1 + $0x3a0] sm:$0xff] }
 0xdd0   :  { %1343 = vmatpush.msrb.mxu1 %v1318_v28 }
 0xdd2   :  { %1344 = vmatpush.msrb.mxu1 %v1317_v29 }
 0xe39   :  { %v1269_v22 = vpop.xlane.xlu2 %1268 }
 0xe3a   :  { %v1273_v20 = vmul.f32 %v1269_v22, %v1907_v37 }
 0xe3c   :  { %v1275_v21 = vsub.f32 %v1263_v11, %v1273_v20 }
 0xe3e   :  { %v1277_v63 = vmul.f32 %v1275_v21, %v1275_v21 }
 0xe40   :  { %v1279_v23 = vsel %vm79_vm4, %v1277_v63, 0.0 }
 0xe41   :  { %v1272_v62 = vpop.xlane.xlu0 %1271  ;;  %1280 = vadd.xlane.f32.xlu1 %v1279_v23 }
 0xe42   :  { %v1274_v18 = vmul.f32 %v1272_v62, %v1907_v37 }
 0xe44   :  { %v1276_v24 = vsub.f32 %v1264_v17, %v1274_v18  ;;  %v1444_v17 = vld [vmem:[%s2517_s1 + $0x3b8] sm:$0xff]  ;;  %v1442_v18 = vld [vmem:[%s2517_s1 + $0x3a8] sm:$0xff] }
 0xe45   :  { %1467 = vmatpush.msrb.mxu2 %v1444_v17 }
 0xe46   :  { %v1278_v27 = vmul.f32 %v1276_v24, %v1276_v24 }
 0xe48   :  { %v1282_v25 = vsel %vm79_vm4, %v1278_v27, 0.0 }
 0xe49   :  { %1283 = vadd.xlane.f32.xlu2 %v1282_v25 }
 0xeb4   :  { %v1281_v30 = vpop.xlane.xlu1 %1280 }
 0xeb5   :  { %v1285_v31 = vmul.f32 %v1281_v30, %v1907_v37 }
 0xeb7   :  { %v1287_v32 = vadd.f32 1e-12, %v1285_v31  ;;  %v1440_v31 = vld [vmem:[%s2517_s1 + $0x398] sm:$0xff] }
 0xeb9   :  { %1795 = vrsqrt.f32 %v1287_v32  ;;  %vm1295_vm6 = vweird.f32 %v1287_v32 }
 0xebc   :  { %v1284_v10 = vpop.xlane.xlu2 %1283 }
 0xebd   :  { %v1286_v33 = vmul.f32 %v1284_v10, %v1907_v37 }
 0xebf   :  { %v1796_v35 = vpop.eup %1795  ;;  %v1288_v36 = vadd.f32 1e-12, %v1286_v33 }
 0xec0   :  { %v1290_v6 = vmul.f32 %v1796_v35, %v1287_v32  ;;  %vm1296_vm5 = vweird.f32 %v1796_v35 }
 0xec1   :  { %1797 = vrsqrt.f32 %v1288_v36  ;;  %vm1297_vm7 = vmor %vm1295_vm6, %vm1296_vm5  ;;  %vm1305_vm9 = vweird.f32 %v1288_v36 }
 0xec2   :  { %v1291_v38 = vmul.f32 %v1796_v35, %v1290_v6 }
 0xec4   :  { %v1292_v39 = vmul.f32 0.5, %v1291_v38 }
 0xec6   :  { %v1293_v40 = vsub.f32 1.5, %v1292_v39 }
 0xec7   :  { %v1798_v41 = vpop.eup %1797 }
 0xec8   :  { %v1294_v53 = vmul.f32 %v1796_v35, %v1293_v40  ;;  %v1300_v42 = vmul.f32 %v1798_v41, %v1288_v36  ;;  %vm1306_vm8 = vweird.f32 %v1798_v41 }
 0xec9   :  { %vm1307_vm11 = vmor %vm1305_vm9, %vm1306_vm8 }
 0xeca   :  { %v1298_v44 = vsel %vm1297_vm7, %v1796_v35, %v1294_v53  ;;  %v1301_v59 = vmul.f32 %v1798_v41, %v1300_v42 }
 0xecb   :  { %v1309_v45 = vmul.f32 %v1298_v44, %v1275_v21  ;;  %v1443_v21 = vld [vmem:[%s2517_s1 + $0x3b0] sm:$0xff] }
 0xecc   :  { %v1302_v47 = vmul.f32 0.5, %v1301_v59  ;;  %1468 = vmatpush.msrb.mxu2 %v1443_v21 }
 0xecd   :  { %v1312_v48 = vmul.f32 %v1737_v43, %v1309_v45 }
 0xece   :  { %v1303_v50 = vsub.f32 1.5, %v1302_v47  ;;  %1469 = vmatpush.msrb.mxu2 %v1442_v18 }
 0xecf   :  { %v2403_v51 = vadd.f32 %v1738_v46, %v1312_v48 }
 0xed0   :  { %v1304_v49 = vmul.f32 %v1798_v41, %v1303_v50  ;;  %1470 = vmatpush.msrb.mxu2 %v1441_v26 }
 0xed1   :  { %1701 = vmatmul.msk.f32.vlgmr.msrb.gmra.mxu1 %vm79_vm4, %v2403_v51 }
 0xed2   :  { %v1308_v52 = vsel %vm1307_vm11, %v1798_v41, %v1304_v49  ;;  %1471 = vmatpush.msrb.mxu2 %v1440_v31 }
 0xed3   :  { %v1310_v55 = vmul.f32 %v1308_v52, %v1276_v24 }
 0xed5   :  { %v1313_v54 = vmul.f32 %v1737_v43, %v1310_v55 }
 0xed7   :  { %v2407_v56 = vadd.f32 %v1738_v46, %v1313_v54 }
 0xed9   :  { %1702 = vmatmul.msk.f32.gmra.mxu1 %vm79_vm4, %v2407_v56 }
 0xf4e   :  { %v1346_v58 = vpop.f32.mrf.mxu1 }
 0xf4f   :  { %v2414_v60 = vadd.f32 %v1739_v57, %v1346_v58 }
 0xf51   :  { %v2417_v61 = vmul.f32 0.70710677, %v2414_v60 }
 0xf53   :  { %v1356_v0 = vmul.f32 %v2417_v61, %v2417_v61 }
 0xf55   :  { %v1357_v2 = vmin.f32 %v1356_v0, 16.0 }
 0xf56   :  { %v1349_v3 = vpop.f32.mrf.mxu1 }
 0xf57   :  { %v1358_v5 = vmul.f32 2.1237322e-06, %v1357_v2  ;;  %v1369_v7 = vmul.f32 3.8918573e-05, %v1357_v2  ;;  %v2424_v8 = vadd.f32 %v1739_v57, %v1349_v3 }
 0xf59   :  { %v1359_v9 = vadd.f32 0.00028619796, %v1358_v5  ;;  %v1370_v11 = vadd.f32 0.001143296, %v1369_v7  ;;  %v2430_v12 = vmul.f32 0.70710677, %v2424_v8 }
 0xf5b   :  { %v1360_v14 = vmul.f32 %v1359_v9, %v1357_v2  ;;  %v1371_v15 = vmul.f32 %v1370_v11, %v1357_v2  ;;  %v1396_v16 = vmul.f32 %v2430_v12, %v2430_v12 }
 0xf5d   :  { %v1372_v19 = vadd.f32 0.014752088, %v1371_v15  ;;  %v1361_v22 = vadd.f32 0.0036580483, %v1360_v14  ;;  %v1397_v20 = vmin.f32 %v1396_v16, 16.0 }
 0xf5f   :  { %v1373_v63 = vmul.f32 %v1372_v19, %v1357_v2  ;;  %v1398_v23 = vmul.f32 2.1237322e-06, %v1397_v20  ;;  %v1409_v62 = vmul.f32 3.8918573e-05, %v1397_v20  ;;  %v1362_v27 = vmul.f32 %v1361_v22, %v1357_v2 }
 0xf60   :  { %v1352_v22 = vmul.f32 0.5, %v2414_v60  ;;  %v1740_v60 = vld [vmem:[%s2517_s1 + $0x3d8] ss:$0 sm:$0xff] }
 0xf61   :  { %v1374_v24 = vadd.f32 0.112945676, %v1373_v63  ;;  %v1399_v25 = vadd.f32 0.00028619796, %v1398_v23  ;;  %v1410_v34 = vadd.f32 0.001143296, %v1409_v62 }
 0xf62   :  { %v1363_v10 = vadd.f32 0.05243302, %v1362_v27 }
 0xf63   :  { %v1375_v28 = vmul.f32 %v1374_v24, %v1357_v2  ;;  %v1400_v29 = vmul.f32 %v1399_v25, %v1397_v20  ;;  %v1411_v30 = vmul.f32 %v1410_v34, %v1397_v20  ;;  %v1353_v25 = vmul.f32 0.5, %v2424_v8 }
 0xf64   :  { %v1364_v39 = vmul.f32 %v1363_v10, %v1357_v2 }
 0xf65   :  { %v1376_v32 = vadd.f32 0.4994258, %v1375_v28  ;;  %v1412_v33 = vadd.f32 0.014752088, %v1411_v30  ;;  %v1401_v36 = vadd.f32 0.0036580483, %v1400_v29 }
 0xf66   :  { %v1365_v42 = vadd.f32 0.18741608, %v1364_v39 }
 0xf67   :  { %v1377_v35 = vmul.f32 %v1376_v32, %v1357_v2  ;;  %v1413_v6 = vmul.f32 %v1412_v33, %v1397_v20  ;;  %v1402_v41 = vmul.f32 %v1401_v36, %v1397_v20 }
 0xf68   :  { %v1366_v46 = vmul.f32 %v1365_v42, %v1357_v2 }
 0xf69   :  { %v1378_v38 = vadd.f32 1.0, %v1377_v35  ;;  %v1414_v40 = vadd.f32 0.112945676, %v1413_v6  ;;  %v1403_v44 = vadd.f32 0.05243302, %v1402_v41 }
 0xf6a   :  { %v1367_v55 = vadd.f32 1.1283791, %v1366_v46 }
 0xf6b   :  { %1799 = vrcp.f32 %v1378_v38  ;;  %v1415_v53 = vmul.f32 %v1414_v40, %v1397_v20  ;;  %v1404_v50 = vmul.f32 %v1403_v44, %v1397_v20  ;;  %v1390_v52 = vand.u32 2147483648, %v1378_v38 }
 0xf6c   :  { %v1388_v57 = vand.u32 2147483647, %v1378_v38  ;;  %vm1384_vm14 = vweird.f32 %v1378_v38  ;;  %v1368_v5 = vmul.f32 %v1367_v55, %v2417_v61 }
 0xf6d   :  { %v1416_v43 = vadd.f32 0.4994258, %v1415_v53  ;;  %v1405_v58 = vadd.f32 0.18741608, %v1404_v50  ;;  %v1391_v3 = vor.u32 1.1754944e-38, %v1390_v52  ;;  %v1557_v52 = vld [vmem:[%s2517_s1 + $0x3f0] sm:$0xff] }
 0xf6e   :  { %vm1389_vm0 = vcmp.eq.f32.partialorder %v1388_v57, 8.507059e+37 }
 0xf6f   :  { %v1417_v59 = vmul.f32 %v1416_v43, %v1397_v20  ;;  %v1406_v1 = vmul.f32 %v1405_v58, %v1397_v20 }
 0xf71   :  { %v1800_v45 = vpop.eup %1799  ;;  %v1418_v48 = vadd.f32 1.0, %v1417_v59  ;;  %v1407_v16 = vadd.f32 1.1283791, %v1406_v1  ;;  %v1560_v59 = vld [vmem:[%s2517_s1 + $0x408] sm:$0xff]  ;;  %v1741_v1 = vld [vmem:[%s2517_s1 + $0x3e0] ss:$0 sm:$0xff] }
 0xf72   :  { %v1380_v47 = vmul.f32 %v1800_v45, %v1378_v38  ;;  %vm1385_vm13 = vweird.f32 %v1800_v45  ;;  %1578 = vmatpush.msra.mxu0 %v1560_v59 }
 0xf73   :  { %1801 = vrcp.f32 %v1418_v48  ;;  %vm1386_vm15 = vmor %vm1384_vm14, %vm1385_vm13  ;;  %v1430_v15 = vand.u32 2147483648, %v1418_v48  ;;  %v1428_v19 = vand.u32 2147483647, %v1418_v48  ;;  %vm1424_vm2 = vweird.f32 %v1418_v48 }
 0xf74   :  { %v1381_v49 = vsub.f32 1.0, %v1380_v47  ;;  %v1408_v62 = vmul.f32 %v1407_v16, %v2430_v12 }
 0xf75   :  { %v1431_v61 = vor.u32 1.1754944e-38, %v1430_v15  ;;  %vm1429_vm5 = vcmp.eq.f32.partialorder %v1428_v19, 8.507059e+37  ;;  %v1742_v15 = vld [vmem:[%s2517_s1 + $0x3e8] ss:$0 sm:$0xff] }
 0xf76   :  { %v1382_v54 = vmul.f32 %v1800_v45, %v1381_v49 }
 0xf78   :  { %v1383_v0 = vadd.f32 %v1800_v45, %v1382_v54 }
 0xf79   :  { %v1802_v4 = vpop.eup %1801 }
 0xf7a   :  { %v1387_v7 = vsel %vm1386_vm15, %v1800_v45, %v1383_v0  ;;  %v1420_v9 = vmul.f32 %v1802_v4, %v1418_v48  ;;  %vm1425_vm1 = vweird.f32 %v1802_v4  ;;  %v1559_v45 = vld [vmem:[%s2517_s1 + $0x400] sm:$0xff]  ;;  %v1558_v48 = vld [vmem:[%s2517_s1 + $0x3f8] sm:$0xff] }
 0xf7b   :  { %v1392_v2 = vsel %vm1389_vm0, %v1391_v3, %v1387_v7  ;;  %vm1426_vm3 = vmor %vm1424_vm2, %vm1425_vm1  ;;  %1579 = vmatpush.msra.mxu0 %v1559_v45 }
 0xf7c   :  { %v1393_v11 = vmul.f32 %v1392_v2, %v1368_v5  ;;  %v1421_v13 = vsub.f32 1.0, %v1420_v9 }
 0xf7d   :  { %1580 = vmatpush.msra.mxu0 %v1558_v48 }
 0xf7e   :  { %v1703_v14 = vclamps-f32 %v1393_v11, 1.0  ;;  %v1422_v17 = vmul.f32 %v1802_v4, %v1421_v13 }
 0xf7f   :  { %1581 = vmatpush.msra.mxu0 %v1557_v52 }
 0xf80   :  { %v1436_v21 = vadd.f32 1.0, %v1703_v14  ;;  %v1423_v63 = vadd.f32 %v1802_v4, %v1422_v17 }
 0xf82   :  { %v1438_v23 = vmul.f32 %v1436_v21, %v1352_v22  ;;  %v1427_v20 = vsel %vm1426_vm3, %v1802_v4, %v1423_v63  ;;  %v1533_v22 = vld [vmem:[%s2517_s1 + $0x98] sm:$0x3]  ;;  %v1590_v63 = vld [vmem:[%s2517_s1 + $0x430] sm:$0xff] }
 0xf83   :  { %v1432_v18 = vsel %vm1429_vm5, %v1431_v61, %v1427_v20  ;;  %v1588_v61 = vld [vmem:[%s2517_s1 + $0x420] sm:$0xff]  ;;  %v1743_v20 = vld [vmem:[%s2517_s1 + $0x410] ss:$0 sm:$0xff] }
 0xf84   :  { %1705 = vmatmul.msk.f32.vlgmr.msrb.gmra.mxu2 %vm753_vm10, %v1438_v23  ;;  %v1433_v24 = vmul.f32 %v1432_v18, %v1408_v62  ;;  %v1589_v23 = vld [vmem:[%s2517_s1 + $0x428] sm:$0xff]  ;;  %v1587_v62 = vld [vmem:[%s2517_s1 + $0x418] sm:$0xff] }
 0xf86   :  { %v1704_v27 = vclamps-f32 %v1433_v24, 1.0 }
 0xf88   :  { %v1437_v34 = vadd.f32 1.0, %v1704_v27 }
 0xf8a   :  { %v1439_v26 = vmul.f32 %v1437_v34, %v1353_v25  ;;  %v1744_v25 = vld [vmem:[%s2517_s1 + $0x438] ss:$0 sm:$0xff] }
 0xf8c   :  { %1706 = vmatmul.msk.f32.gmra.mxu2 %vm753_vm10, %v1439_v26 }
0x1007   :  { %v1473_v28 = vpop.f32.mrf.mxu2 }
0x1008   :  { %v1474_v29 = vadd.f32 %v1740_v60, %v1473_v28 }
0x100a   :  { %v1479_v12 = vadd.f32 %v1474_v29, %v2403_v51 }
0x100c   :  { %v1483_v30 = vsel %vm79_vm4, %v1479_v12, 0.0 }
0x100d   :  { %1484 = vadd.xlane.f32.xlu1 %v1483_v30 }
0x100f   :  { %v1476_v31 = vpop.f32.mrf.mxu2 }
0x1010   :  { %v1477_v32 = vadd.f32 %v1740_v60, %v1476_v31 }
0x1012   :  { %v1480_v10 = vadd.f32 %v1477_v32, %v2407_v56 }
0x1014   :  { %v1486_v8 = vsel %vm79_vm4, %v1480_v10, 0.0 }
0x1015   :  { %1487 = vadd.xlane.f32.xlu0 %v1486_v8 }
0x1080   :  { %v1485_v33 = vpop.xlane.xlu1 %1484 }
0x1081   :  { %v1489_v35 = vmul.f32 %v1485_v33, %v1907_v37 }
0x1083   :  { %v1491_v36 = vsub.f32 %v1479_v12, %v1489_v35 }
0x1085   :  { %v1493_v6 = vmul.f32 %v1491_v36, %v1491_v36 }
0x1087   :  { %v1495_v38 = vsel %vm79_vm4, %v1493_v6, 0.0 }
0x1088   :  { %1496 = vadd.xlane.f32.xlu0 %v1495_v38  ;;  %v1488_v39 = vpop.xlane.xlu0 %1487 }
0x1089   :  { %v1490_v51 = vmul.f32 %v1488_v39, %v1907_v37 }
0x108b   :  { %v1492_v40 = vsub.f32 %v1480_v10, %v1490_v51 }
0x108d   :  { %v1494_v41 = vmul.f32 %v1492_v40, %v1492_v40 }
0x108f   :  { %v1498_v53 = vsel %vm79_vm4, %v1494_v41, 0.0 }
0x1090   :  { %1499 = vadd.xlane.f32.xlu2 %v1498_v53 }
0x10fb   :  { %v1497_v56 = vpop.xlane.xlu0 %1496 }
0x10fc   :  { %v1501_v42 = vmul.f32 %v1497_v56, %v1907_v37 }
0x10fe   :  { %v1503_v43 = vadd.f32 1e-12, %v1501_v42 }
0x1100   :  { %1803 = vrsqrt.f32 %v1503_v43  ;;  %vm1511_vm6 = vweird.f32 %v1503_v43 }
0x1103   :  { %v1500_v44 = vpop.xlane.xlu2 %1499 }
0x1104   :  { %v1502_v46 = vmul.f32 %v1500_v44, %v1907_v37 }
0x1106   :  { %v1804_v47 = vpop.eup %1803  ;;  %v1504_v49 = vadd.f32 1e-12, %v1502_v46 }
0x1107   :  { %v1506_v50 = vmul.f32 %v1804_v47, %v1503_v43  ;;  %vm1512_vm10 = vweird.f32 %v1804_v47 }
0x1108   :  { %1805 = vrsqrt.f32 %v1504_v49  ;;  %vm1513_vm7 = vmor %vm1511_vm6, %vm1512_vm10  ;;  %vm1521_vm9 = vweird.f32 %v1504_v49 }
0x1109   :  { %v1507_v55 = vmul.f32 %v1804_v47, %v1506_v50 }
0x110b   :  { %v1508_v54 = vmul.f32 0.5, %v1507_v55 }
0x110d   :  { %v1509_v57 = vsub.f32 1.5, %v1508_v54 }
0x110e   :  { %v1806_v37 = vpop.eup %1805 }
0x110f   :  { %v1516_v58 = vmul.f32 %v1806_v37, %v1504_v49  ;;  %v1510_v0 = vmul.f32 %v1804_v47, %v1509_v57  ;;  %vm1522_vm8 = vweird.f32 %v1806_v37 }
0x1110   :  { %vm1523_vm11 = vmor %vm1521_vm9, %vm1522_vm8 }
0x1111   :  { %v1517_v3 = vmul.f32 %v1806_v37, %v1516_v58  ;;  %v1514_v5 = vsel %vm1513_vm7, %v1804_v47, %v1510_v0 }
0x1112   :  { %v1525_v9 = vmul.f32 %v1514_v5, %v1491_v36 }
0x1113   :  { %v1518_v4 = vmul.f32 0.5, %v1517_v3 }
0x1114   :  { %v1528_v16 = vmul.f32 %v1741_v1, %v1525_v9 }
0x1115   :  { %v1519_v7 = vsub.f32 1.5, %v1518_v4 }
0x1116   :  { %v1531_v19 = vadd.f32 %v1742_v15, %v1528_v16 }
0x1117   :  { %v1520_v2 = vmul.f32 %v1806_v37, %v1519_v7 }
0x1119   :  { %v1524_v11 = vsel %vm1523_vm11, %v1806_v37, %v1520_v2 }
0x111a   :  { %v1526_v13 = vmul.f32 %v1524_v11, %v1492_v40 }
0x111c   :  { %v1529_v14 = vmul.f32 %v1741_v1, %v1526_v13 }
0x111e   :  { %v1532_v17 = vadd.f32 %v1742_v15, %v1529_v14 }
0x1120   :  { %1551 = vmatpush.msrb.mxu3 %v1532_v17 }
0x1122   :  { %1552 = vmatpush.msrb.mxu3 %v1531_v19 }
0x1123   :  { %1707 = vmatmul.msk.f32.vlgmr.msrb.gmra.mxu3 %vm232_vm12, %v1533_v22  ;;  %vm1616_vm12 = vcmask 17408  }
0x1124   :  { %1608 = vmatpush.msra.mxu3 %v1590_v63 }
0x1126   :  { %1609 = vmatpush.msra.mxu3 %v1589_v23 }
0x1128   :  { %1610 = vmatpush.msra.mxu3 %v1588_v61 }
0x112a   :  { %1611 = vmatpush.msra.mxu3 %v1587_v62 }
0x11a6   :  { %v1554_v21 = vpop.f32.mrf.mxu3 }
0x11a7   :  { %1708 = vmatmul.msk.f32.vlgmr.msra.gmra.mxu0 %vm79_vm4, %v1554_v21 }
0x1224   :  { %v1583_v18 = vpop.f32.mrf.mxu0 }
0x1225   :  { %v1584_v24 = vadd.f32 %v1743_v20, %v1583_v18 }
0x1227   :  { %1807 = vtanh.f32 %v1584_v24 }
0x122d   :  { %v1808_v27 = vpop.eup %1807 }
0x122e   :  { %1709 = vmatmul.msk.f32.vlgmr.msra.gmra.mxu3 %vm79_vm4, %v1808_v27 }
0x12b1   :  { %v1613_v34 = vpop.f32.mrf.mxu3 }
0x12b2   :  { %v1614_v26 = vadd.f32 %v1744_v25, %v1613_v34 }
0x12b4   :  { %1617 = vst.msk [vmem:[#allocation2] sm:$0x3] %vm1616_vm12, %v1614_v26 }
0x12b5   :  { %1628 = dma.vmem_to_hbm [thread:$0]  %s1624_s25, 32, %s1626_s28, [#allocation3]  }
0x12b6   :  { %1833 = dma.done.wait [#allocation3], 32  }
0x12b7   :  { %1834 = vsyncadd [#allocation3], 4294967264 }
0x12b8   :  { %1633 = vsyncpa [#allocation3], 1 }

</bundles_post_ra>
